<compile_context>
chip_gen: v5e
topology: v5e:2x2
jax: 0.10.0
libtpu: 0.0.40
codegen_flags: <defaults>
</compile_context>

<pallas_src>
import functools

import jax
import jax.numpy as jnp
from jax.experimental import pallas as pl
from jax.experimental.pallas import tpu as pltpu

BN_EPS = 1e-5
GIN_EPS = 0.0          # torch_geometric GINConv default eps
LANE = 128
SUBLANE = 8
ROW_TILE = 256         # aggregation M tile
K_TILE = 512           # aggregation K tile (node dim is padded to this)


def _round_up(x, m):
    return ((x + m - 1) // m) * m


def _pad2(x, rows, cols):
    return jnp.pad(x, ((0, rows - x.shape[0]), (0, cols - x.shape[1])))


# ----------------------------------------------------------------------------
# Pallas kernels
# ----------------------------------------------------------------------------
def _gin_layer_kernel(a_ref, h_ref, w1_ref, b1_ref, w2_ref, b2_ref,
                      o_ref, acc_ref, *, k_tile, apply_relu):
    """One GIN layer (not the last).  grid = (row tiles i, K tiles k).
    h is fully VMEM-resident; the K chunk is sliced in-kernel.  The MLP
    epilogue (BN folded into the Linears) runs on the last K step."""
    k = pl.program_id(1)
    start = pl.multiple_of(k * k_tile, k_tile)
    # GIN aggregation: (A + (1+eps)I) @ h — bf16 operands, f32 MXU accumulation.
    prod = jnp.dot(a_ref[...], h_ref[pl.ds(start, k_tile), :],
                   preferred_element_type=jnp.float32)

    @pl.when(k == 0)
    def _():
        acc_ref[...] = prod          # init by assignment (no zeroing pass)

    @pl.when(k > 0)
    def _():
        acc_ref[...] += prod

    @pl.when(k == pl.num_programs(1) - 1)
    def _():
        # MLP epilogue: Linear -> (folded BN) -> ReLU -> Linear -> (folded BN)
        z = jnp.dot(acc_ref[...].astype(jnp.bfloat16), w1_ref[...],
                    preferred_element_type=jnp.float32) + b1_ref[...]
        z = jnp.maximum(z, 0.0)
        z = jnp.dot(z.astype(jnp.bfloat16), w2_ref[...],
                    preferred_element_type=jnp.float32) + b2_ref[...]
        if apply_relu:               # dropout = identity in eval mode
            z = jnp.maximum(z, 0.0)
        o_ref[...] = z.astype(o_ref.dtype)


def _gin_last_pool_classify_kernel(a_ref, h_ref, w1_ref, b1_ref, w2_ref, b2_ref,
                                   p_ref, wc_ref, bc_ref, o_ref,
                                   acc_ref, pool_ref, *, k_tile):
    """Last GIN layer fused with global_mean_pool (row-normalized P) and the
    classifier Linear.  grid = (row tiles i, K tiles k), both 'arbitrary'
    because the pooled accumulator is resident across the row axis."""
    i = pl.program_id(0)
    k = pl.program_id(1)
    start = pl.multiple_of(k * k_tile, k_tile)
    prod = jnp.dot(a_ref[...], h_ref[pl.ds(start, k_tile), :],
                   preferred_element_type=jnp.float32)

    @pl.when(k == 0)
    def _():
        acc_ref[...] = prod

    @pl.when(k > 0)
    def _():
        acc_ref[...] += prod

    @pl.when(k == pl.num_programs(1) - 1)
    def _():
        z = jnp.dot(acc_ref[...].astype(jnp.bfloat16), w1_ref[...],
                    preferred_element_type=jnp.float32) + b1_ref[...]
        z = jnp.maximum(z, 0.0)
        z = jnp.dot(z.astype(jnp.bfloat16), w2_ref[...],
                    preferred_element_type=jnp.float32) + b2_ref[...]
        # Last layer: no ReLU after BN; eval-mode dropout = identity.
        # Fused pooling: accumulate P_tile @ z (f32; padded rows of z have zero
        # columns in P so they never contribute).
        pz = jnp.dot(p_ref[...], z, preferred_element_type=jnp.float32)

        @pl.when(i == 0)
        def _():
            pool_ref[...] = pz

        @pl.when(i > 0)
        def _():
            pool_ref[...] += pz

        @pl.when(i == pl.num_programs(0) - 1)
        def _():
            o_ref[...] = jnp.dot(pool_ref[...].astype(jnp.bfloat16), wc_ref[...],
                                 preferred_element_type=jnp.float32) + bc_ref[...]


# ----------------------------------------------------------------------------
# pallas_call wrappers
# ----------------------------------------------------------------------------
def _vmem_limit_bytes(row_tile, k_tile, n_pad, d_in, d_out, g_pad=0, c_pad=0):
    """Rough working-set estimate (double-buffered inputs, resident h,
    weights, scratch) + slack — keeps the request well under v7x's 64 MiB."""
    b = 2 * row_tile * k_tile * 2                       # A_hat tiles (bf16)
    b += 2 * n_pad * d_in * 2                           # resident h (bf16)
    b += 2 * (d_in * d_out + d_out * d_out) * 2         # w1, w2 (bf16)
    b += 2 * 2 * d_out * 4                              # b1, b2 (f32)
    b += row_tile * d_in * 4                            # f32 accumulator
    if g_pad:
        b += 2 * g_pad * row_tile * 4                   # P column tiles (f32)
        b += 2 * (d_out * c_pad * 2 + c_pad * 4)        # wc (bf16), bc (f32)
        b += g_pad * d_out * 4                          # pool scratch
        b += 2 * g_pad * c_pad * 4                      # logits output
    else:
        b += 2 * row_tile * d_out * 2                   # bf16 h output tiles
    return int(1.5 * b) + (16 << 20)                    # alignment/compiler slack


def gin_layer(a_hat, h, w1, b1, w2, b2, *, apply_relu,
              row_tile=ROW_TILE, k_tile=K_TILE):
    n_pad = a_hat.shape[0]
    d_in = w1.shape[0]
    d_out = w2.shape[1]
    grid = (n_pad // row_tile, n_pad // k_tile)
    return pl.pallas_call(
        functools.partial(_gin_layer_kernel, k_tile=k_tile, apply_relu=apply_relu),
        out_shape=jax.ShapeDtypeStruct((n_pad, d_out), jnp.bfloat16),
        grid_spec=pltpu.PrefetchScalarGridSpec(
            num_scalar_prefetch=0,
            grid=grid,
            in_specs=[
                pl.BlockSpec((row_tile, k_tile), lambda i, k: (i, k)),  # A_hat tile
                pl.BlockSpec((n_pad, d_in), lambda i, k: (0, 0)),       # h (resident)
                pl.BlockSpec((d_in, d_out), lambda i, k: (0, 0)),       # w1 (resident)
                pl.BlockSpec((1, d_out), lambda i, k: (0, 0)),          # b1
                pl.BlockSpec((d_out, d_out), lambda i, k: (0, 0)),      # w2
                pl.BlockSpec((1, d_out), lambda i, k: (0, 0)),          # b2
            ],
            out_specs=pl.BlockSpec((row_tile, d_out), lambda i, k: (i, 0)),
            scratch_shapes=[pltpu.VMEM((row_tile, d_in), jnp.float32)],
        ),
        compiler_params=pltpu.CompilerParams(
            dimension_semantics=("parallel", "arbitrary"),
            vmem_limit_bytes=_vmem_limit_bytes(row_tile, k_tile, n_pad, d_in, d_out),
        ),
    )(a_hat, h, w1, b1, w2, b2)


def gin_last_layer_pool_classify(a_hat, h, w1, b1, w2, b2, p_mat, wc, bc, *,
                                 row_tile=ROW_TILE, k_tile=K_TILE):
    n_pad = a_hat.shape[0]
    d_in = w1.shape[0]
    d_out = w2.shape[1]
    g_pad = p_mat.shape[0]
    c_pad = wc.shape[1]
    grid = (n_pad // row_tile, n_pad // k_tile)
    return pl.pallas_call(
        functools.partial(_gin_last_pool_classify_kernel, k_tile=k_tile),
        out_shape=jax.ShapeDtypeStruct((g_pad, c_pad), jnp.float32),
        grid_spec=pltpu.PrefetchScalarGridSpec(
            num_scalar_prefetch=0,
            grid=grid,
            in_specs=[
                pl.BlockSpec((row_tile, k_tile), lambda i, k: (i, k)),  # A_hat tile
                pl.BlockSpec((n_pad, d_in), lambda i, k: (0, 0)),       # h (resident)
                pl.BlockSpec((d_in, d_out), lambda i, k: (0, 0)),       # w1
                pl.BlockSpec((1, d_out), lambda i, k: (0, 0)),          # b1
                pl.BlockSpec((d_out, d_out), lambda i, k: (0, 0)),      # w2
                pl.BlockSpec((1, d_out), lambda i, k: (0, 0)),          # b2
                pl.BlockSpec((g_pad, row_tile), lambda i, k: (0, i)),   # P column tile
                pl.BlockSpec((d_out, c_pad), lambda i, k: (0, 0)),      # classifier W
                pl.BlockSpec((1, c_pad), lambda i, k: (0, 0)),          # classifier b
            ],
            out_specs=pl.BlockSpec((g_pad, c_pad), lambda i, k: (0, 0)),
            scratch_shapes=[pltpu.VMEM((row_tile, d_in), jnp.float32),
                            pltpu.VMEM((g_pad, d_out), jnp.float32)],
        ),
        compiler_params=pltpu.CompilerParams(
            # pooled accumulator is resident across the row axis -> 'arbitrary'
            dimension_semantics=("arbitrary", "arbitrary"),
            vmem_limit_bytes=_vmem_limit_bytes(row_tile, k_tile, n_pad, d_in,
                                               d_out, g_pad=g_pad, c_pad=c_pad),
        ),
    )(a_hat, h, w1, b1, w2, b2, p_mat, wc, bc)


# ----------------------------------------------------------------------------
# Parameters, dense adjacency / pooling matrices, host-side BN folding
# ----------------------------------------------------------------------------
def init_params(key, num_features, hidden_dim, num_classes, num_layers=4):
    layers = []
    for layer in range(num_layers):
        in_dim = num_features if layer == 0 else hidden_dim
        key, *ks = jax.random.split(key, 9)
        lp = {
            # Linear weights stored [in, out] (PyTorch [out, in] pre-transposed)
            "w1": jax.random.normal(ks[0], (in_dim, hidden_dim), jnp.float32) * 0.1,
            "b1": jax.random.normal(ks[1], (1, hidden_dim), jnp.float32) * 0.05,
            "g1": 1.0 + 0.1 * jax.random.normal(ks[2], (1, hidden_dim), jnp.float32),
            "be1": 0.05 * jax.random.normal(ks[3], (1, hidden_dim), jnp.float32),
            "m1": 0.05 * jax.random.normal(ks[4], (1, hidden_dim), jnp.float32),
            "v1": 1.0 + 0.1 * jnp.abs(jax.random.normal(ks[5], (1, hidden_dim), jnp.float32)),
            "w2": jax.random.normal(ks[6], (hidden_dim, hidden_dim), jnp.float32) * 0.1,
            "b2": jax.random.normal(ks[7], (1, hidden_dim), jnp.float32) * 0.05,
        }
        key, *ks = jax.random.split(key, 5)
        lp.update({
            "g2": 1.0 + 0.1 * jax.random.normal(ks[0], (1, hidden_dim), jnp.float32),
            "be2": 0.05 * jax.random.normal(ks[1], (1, hidden_dim), jnp.float32),
            "m2": 0.05 * jax.random.normal(ks[2], (1, hidden_dim), jnp.float32),
            "v2": 1.0 + 0.1 * jnp.abs(jax.random.normal(ks[3], (1, hidden_dim), jnp.float32)),
        })
        layers.append(lp)
    key, k1, k2 = jax.random.split(key, 3)
    wc = jax.random.normal(k1, (hidden_dim, num_classes), jnp.float32) * 0.1
    bc = jax.random.normal(k2, (1, num_classes), jnp.float32) * 0.05
    return layers, wc, bc


def build_dense_adjacency_padded(edge_index, num_nodes, n_pad):
    """A_hat[i, j] = #edges j -> i, plus (1 + eps) on the diagonal, built
    directly at padded size (single scatter + single cast to bf16)."""
    src, dst = edge_index[0], edge_index[1]
    a = jnp.zeros((n_pad, n_pad), jnp.float32)
    a = a.at[dst, src].add(1.0)
    idx = jnp.arange(num_nodes)
    a = a.at[idx, idx].add(1.0 + GIN_EPS)
    return a.astype(jnp.bfloat16)   # edge counts exact in bf16 (<= 256 multiplicity)


def build_pool_matrix_padded(batch, num_graphs, g_pad, n_pad):
    n = batch.shape[0]
    batch_pad = jnp.full((n_pad,), -1, jnp.int32).at[:n].set(batch.astype(jnp.int32))
    onehot = (batch_pad[None, :] == jnp.arange(g_pad)[:, None]).astype(jnp.float32)
    counts = jnp.maximum(onehot.sum(axis=1, keepdims=True), 1.0)
    return onehot / counts


def fold_and_pad_params(layers, wc, bc, f_pad, h_pad, c_pad):
    """Fold eval-mode BatchNorms into the Linear weights/biases, zero-pad to
    lane-dense (128) dims, store matmul weights in bf16 (biases stay f32)."""
    prepped = []
    for i, lp in enumerate(layers):
        s1 = lp["g1"] * jax.lax.rsqrt(lp["v1"] + BN_EPS)
        w1 = lp["w1"] * s1
        b1 = (lp["b1"] - lp["m1"]) * s1 + lp["be1"]
        s2 = lp["g2"] * jax.lax.rsqrt(lp["v2"] + BN_EPS)
        w2 = lp["w2"] * s2
        b2 = (lp["b2"] - lp["m2"]) * s2 + lp["be2"]
        d_in_pad = f_pad if i == 0 else h_pad
        prepped.append({
            "w1": _pad2(w1, d_in_pad, h_pad).astype(jnp.bfloat16),
            "b1": _pad2(b1, 1, h_pad),
            "w2": _pad2(w2, h_pad, h_pad).astype(jnp.bfloat16),
            "b2": _pad2(b2, 1, h_pad),
        })
    return (prepped,
            _pad2(wc, h_pad, c_pad).astype(jnp.bfloat16),
            _pad2(bc, 1, c_pad))


# ----------------------------------------------------------------------------
# Forward pass
# ----------------------------------------------------------------------------
def gnn_forward(x, edge_index, batch, num_graphs, layers, wc, bc,
                *, row_tile=ROW_TILE, k_tile=K_TILE):
    # TODO(synk): EGP/CGP expander-edge / virtual-node branches of the PyTorch
    # module are not implemented (default transform_name=None, is_cgp=False).
    n, f = x.shape
    hidden, num_classes = wc.shape
    num_layers = len(layers)

    n_pad = _round_up(n, max(row_tile, k_tile))
    f_pad = _round_up(f, LANE)
    h_pad = _round_up(hidden, LANE)
    c_pad = _round_up(num_classes, LANE)
    g_pad = _round_up(num_graphs, SUBLANE)

    a_hat = build_dense_adjacency_padded(edge_index, n, n_pad)          # bf16
    p_mat = build_pool_matrix_padded(batch, num_graphs, g_pad, n_pad)   # f32

    prepped, wc_p, bc_p = fold_and_pad_params(layers, wc, bc, f_pad, h_pad, c_pad)

    h = _pad2(x, n_pad, f_pad).astype(jnp.bfloat16)
    for i in range(num_layers - 1):
        lp = prepped[i]
        h = gin_layer(a_hat, h, lp["w1"], lp["b1"], lp["w2"], lp["b2"],
                      apply_relu=True, row_tile=row_tile, k_tile=k_tile)

    lp = prepped[-1]
    logits = gin_last_layer_pool_classify(
        a_hat, h, lp["w1"], lp["b1"], lp["w2"], lp["b2"],
        p_mat, wc_p, bc_p, row_tile=row_tile, k_tile=k_tile)
    return logits[:num_graphs, :num_classes]


# Pure-JAX reference mirroring the kernel's dtype policy (bf16 A_hat / h /
# weight operands, f32 accumulation, folded eval-mode BN) so the only
# differences vs. the Pallas path are matmul tiling / accumulation order.
def reference_forward(x, edge_index, batch, num_graphs, layers, wc, bc):
    n = x.shape[0]
    a_hat = build_dense_adjacency_padded(edge_index, n, n)
    p_mat = build_pool_matrix_padded(batch, num_graphs, num_graphs, n)
    h = x.astype(jnp.bfloat16)
    num_layers = len(layers)
    h_last = None
    for i, lp in enumerate(layers):
        s1 = lp["g1"] * jax.lax.rsqrt(lp["v1"] + BN_EPS)
        w1 = (lp["w1"] * s1).astype(jnp.bfloat16)
        b1 = (lp["b1"] - lp["m1"]) * s1 + lp["be1"]
        s2 = lp["g2"] * jax.lax.rsqrt(lp["v2"] + BN_EPS)
        w2 = (lp["w2"] * s2).astype(jnp.bfloat16)
        b2 = (lp["b2"] - lp["m2"]) * s2 + lp["be2"]
        agg = jnp.dot(a_hat, h, preferred_element_type=jnp.float32)
        z = jnp.dot(agg.astype(jnp.bfloat16), w1,
                    preferred_element_type=jnp.float32) + b1
        z = jnp.maximum(z, 0.0)
        z = jnp.dot(z.astype(jnp.bfloat16), w2,
                    preferred_element_type=jnp.float32) + b2
        if i < num_layers - 1:
            z = jnp.maximum(z, 0.0)
            h = z.astype(jnp.bfloat16)
        else:
            h_last = z
    pooled = jnp.dot(p_mat, h_last, preferred_element_type=jnp.float32)
    return jnp.dot(pooled.astype(jnp.bfloat16), wc.astype(jnp.bfloat16),
                   preferred_element_type=jnp.float32) + bc


if __name__ == "__main__":
    # Small synthetic graph batch: 2 graphs of 100 nodes each (pads to 512
    # nodes -> 2 row tiles x 1 K tile in the aggregation kernels).
    NUM_NODES = 200
    NUM_FEATURES = 8
    HIDDEN_DIM = 32
    NUM_CLASSES = 4
    NUM_GRAPHS = 2
    NUM_EDGES = 800
    NODES_PER_GRAPH = NUM_NODES // NUM_GRAPHS

    key = jax.random.PRNGKey(0)
    k_x, k_g, k_src, k_dst, k_params = jax.random.split(key, 5)

    x = jax.random.normal(k_x, (NUM_NODES, NUM_FEATURES), jnp.float32)

    # Edges constrained to stay within each graph's node block.
    graph_of_edge = jax.random.randint(k_g, (NUM_EDGES,), 0, NUM_GRAPHS)
    src_local = jax.random.randint(k_src, (NUM_EDGES,), 0, NODES_PER_GRAPH)
    dst_local = jax.random.randint(k_dst, (NUM_EDGES,), 0, NODES_PER_GRAPH)
    offset = graph_of_edge * NODES_PER_GRAPH
    edge_index = jnp.stack([src_local + offset, dst_local + offset], axis=0)  # [2, E]

    batch = jnp.repeat(jnp.arange(NUM_GRAPHS), NODES_PER_GRAPH)  # [N]

    layers, wc, bc = init_params(k_params, NUM_FEATURES, HIDDEN_DIM, NUM_CLASSES)

    logits = gnn_forward(x, edge_index, batch, NUM_GRAPHS, layers, wc, bc)
    logits = jax.block_until_ready(logits)

    ref = reference_forward(x, edge_index, batch, NUM_GRAPHS, layers, wc, bc)
    assert logits.shape == (NUM_GRAPHS, NUM_CLASSES)
    # Tolerance covers accumulation-order differences between the tiled kernel
    # path and the single-dot reference path (both use the same bf16 casts).
    assert jnp.allclose(logits, ref, rtol=1e-2, atol=1e-2), (logits, ref)

    # TODO(synk): dropout implemented as eval-mode identity (training=False);
    # stochastic training-mode dropout would use pltpu.prng_random_bits.
    print("KERNEL_OK")
</pallas_src>

<mosaic_0001>
module attributes {stable_mosaic.version = 11 : i64} {
  func.func @_gin_layer_kernel(%arg0: i32, %arg1: i32, %arg2: memref<256x512xbf16, #tpu.memory_space<vmem>>, %arg3: memref<512x128xbf16, #tpu.memory_space<vmem>>, %arg4: memref<128x128xbf16, #tpu.memory_space<vmem>>, %arg5: memref<1x128xf32, #tpu.memory_space<vmem>>, %arg6: memref<128x128xbf16, #tpu.memory_space<vmem>>, %arg7: memref<1x128xf32, #tpu.memory_space<vmem>>, %arg8: memref<256x128xbf16, #tpu.memory_space<vmem>>, %arg9: memref<256x128xf32, #tpu.memory_space<vmem>>) attributes {dimension_semantics = [#tpu.dimension_semantics<parallel>, #tpu.dimension_semantics<arbitrary>], iteration_bounds = array<i64: 2, 1>, scalar_prefetch = 0 : i64, scratch_operands = 1 : i64, tpu.core_type = #tpu.core_type<tc>, window_params = [{transform_indices = @transform_0, window_bounds = array<i64: 256, 512>}, {pipeline_mode = #tpu.pipeline_mode<synchronous>, transform_indices = @transform_1, window_bounds = array<i64: 512, 128>}, {pipeline_mode = #tpu.pipeline_mode<synchronous>, transform_indices = @transform_2, window_bounds = array<i64: 128, 128>}, {pipeline_mode = #tpu.pipeline_mode<synchronous>, transform_indices = @transform_3, window_bounds = array<i64: 1, 128>}, {pipeline_mode = #tpu.pipeline_mode<synchronous>, transform_indices = @transform_4, window_bounds = array<i64: 128, 128>}, {pipeline_mode = #tpu.pipeline_mode<synchronous>, transform_indices = @transform_5, window_bounds = array<i64: 1, 128>}, {transform_indices = @transform_6, window_bounds = array<i64: 256, 128>}]} {
    %c512_i32 = arith.constant 512 : i32
    %0 = arith.muli %arg1, %c512_i32 : i32
    %1 = tpu.assume_multiple %0, 512 : i32
    %c0 = arith.constant 0 : index
    %c0_0 = arith.constant 0 : index
    %2 = vector.load %arg2[%c0, %c0_0] : memref<256x512xbf16, #tpu.memory_space<vmem>>, vector<256x512xbf16>
    %3 = arith.index_cast %1 : i32 to index
    %c0_1 = arith.constant 0 : index
    %4 = vector.load %arg3[%3, %c0_1] : memref<512x128xbf16, #tpu.memory_space<vmem>>, vector<512x128xbf16>
    %cst = arith.constant dense<0.000000e+00> : vector<256x128xf32>
    %5 = tpu.matmul %2, %4, %cst {dimension_numbers = #tpu.dot_dimension_numbers<[1], [0], [0], [1], [0, 0, 1, 1], [], []>} : vector<256x512xbf16>, vector<512x128xbf16>, vector<256x128xf32> -> vector<256x128xf32>
    %c0_i32 = arith.constant 0 : i32
    %6 = arith.cmpi eq, %arg1, %c0_i32 : i32
    %7 = arith.extui %6 : i1 to i32
    %c0_i32_2 = arith.constant 0 : i32
    %8 = arith.cmpi ne, %7, %c0_i32_2 : i32
    scf.if %8 {
      %c0_7 = arith.constant 0 : index
      %c0_8 = arith.constant 0 : index
      %15 = vector.load %arg9[%c0_7, %c0_8] : memref<256x128xf32, #tpu.memory_space<vmem>>, vector<256x128xf32>
      tpu.vector_store %arg9[%c0_7, %c0_8], %5 {strides = array<i32>} : memref<256x128xf32, #tpu.memory_space<vmem>>, vector<256x128xf32>,
    } else {
    }
    %c0_i32_3 = arith.constant 0 : i32
    %9 = arith.cmpi sgt, %arg1, %c0_i32_3 : i32
    %10 = arith.extui %9 : i1 to i32
    %c0_i32_4 = arith.constant 0 : i32
    %11 = arith.cmpi ne, %10, %c0_i32_4 : i32
    scf.if %11 {
      %c0_7 = arith.constant 0 : index
      %c0_8 = arith.constant 0 : index
      %15 = vector.load %arg9[%c0_7, %c0_8] : memref<256x128xf32, #tpu.memory_space<vmem>>, vector<256x128xf32>
      %16 = arith.addf %15, %5 : vector<256x128xf32>
      %c0_9 = arith.constant 0 : index
      %c0_10 = arith.constant 0 : index
      %17 = vector.load %arg9[%c0_9, %c0_10] : memref<256x128xf32, #tpu.memory_space<vmem>>, vector<256x128xf32>
      tpu.vector_store %arg9[%c0_9, %c0_10], %16 {strides = array<i32>} : memref<256x128xf32, #tpu.memory_space<vmem>>, vector<256x128xf32>,
    } else {
    }
    %c0_i32_5 = arith.constant 0 : i32
    %12 = arith.cmpi eq, %arg1, %c0_i32_5 : i32
    %13 = arith.extui %12 : i1 to i32
    %c0_i32_6 = arith.constant 0 : i32
    %14 = arith.cmpi ne, %13, %c0_i32_6 : i32
    scf.if %14 {
      %c0_7 = arith.constant 0 : index
      %c0_8 = arith.constant 0 : index
      %15 = vector.load %arg9[%c0_7, %c0_8] : memref<256x128xf32, #tpu.memory_space<vmem>>, vector<256x128xf32>
      %16 = arith.truncf %15 : vector<256x128xf32> to vector<256x128xbf16>
      %c0_9 = arith.constant 0 : index
      %c0_10 = arith.constant 0 : index
      %17 = vector.load %arg4[%c0_9, %c0_10] : memref<128x128xbf16, #tpu.memory_space<vmem>>, vector<128x128xbf16>
      %cst_11 = arith.constant dense<0.000000e+00> : vector<256x128xf32>
      %18 = tpu.matmul %16, %17, %cst_11 {dimension_numbers = #tpu.dot_dimension_numbers<[1], [0], [0], [1], [0, 0, 1, 1], [], []>} : vector<256x128xbf16>, vector<128x128xbf16>, vector<256x128xf32> -> vector<256x128xf32>
      %c0_12 = arith.constant 0 : index
      %c0_13 = arith.constant 0 : index
      %19 = vector.load %arg5[%c0_12, %c0_13] : memref<1x128xf32, #tpu.memory_space<vmem>>, vector<1x128xf32>
      %20 = vector.broadcast %19 : vector<1x128xf32> to vector<256x128xf32>
      %21 = arith.addf %18, %20 : vector<256x128xf32>
      %cst_14 = arith.constant 0.000000e+00 : f32
      %22 = vector.broadcast %cst_14 : f32 to vector<256x128xf32>
      %23 = arith.maximumf %21, %22 : vector<256x128xf32>
      %24 = arith.truncf %23 : vector<256x128xf32> to vector<256x128xbf16>
      %c0_15 = arith.constant 0 : index
      %c0_16 = arith.constant 0 : index
      %25 = vector.load %arg6[%c0_15, %c0_16] : memref<128x128xbf16, #tpu.memory_space<vmem>>, vector<128x128xbf16>
      %cst_17 = arith.constant dense<0.000000e+00> : vector<256x128xf32>
      %26 = tpu.matmul %24, %25, %cst_17 {dimension_numbers = #tpu.dot_dimension_numbers<[1], [0], [0], [1], [0, 0, 1, 1], [], []>} : vector<256x128xbf16>, vector<128x128xbf16>, vector<256x128xf32> -> vector<256x128xf32>
      %c0_18 = arith.constant 0 : index
      %c0_19 = arith.constant 0 : index
      %27 = vector.load %arg7[%c0_18, %c0_19] : memref<1x128xf32, #tpu.memory_space<vmem>>, vector<1x128xf32>
      %28 = vector.broadcast %27 : vector<1x128xf32> to vector<256x128xf32>
      %29 = arith.addf %26, %28 : vector<256x128xf32>
      %cst_20 = arith.constant 0.000000e+00 : f32
      %30 = vector.broadcast %cst_20 : f32 to vector<256x128xf32>
      %31 = arith.maximumf %29, %30 : vector<256x128xf32>
      %32 = arith.truncf %31 : vector<256x128xf32> to vector<256x128xbf16>
      %c0_21 = arith.constant 0 : index
      %c0_22 = arith.constant 0 : index
      %33 = vector.load %arg8[%c0_21, %c0_22] : memref<256x128xbf16, #tpu.memory_space<vmem>>, vector<256x128xbf16>
      tpu.vector_store %arg8[%c0_21, %c0_22], %32 {strides = array<i32>} : memref<256x128xbf16, #tpu.memory_space<vmem>>, vector<256x128xbf16>,
    } else {
    }
    return
  }
  func.func @transform_0(%arg0: i32, %arg1: i32) -> (i32, i32) {
    %c0_i32 = arith.constant 0 : i32
    return %arg0, %arg1 : i32, i32
  }
  func.func @transform_1(%arg0: i32, %arg1: i32) -> (i32, i32) {
    %c0_i32 = arith.constant 0 : i32
    %c0_i32_0 = arith.constant 0 : i32
    %c0_i32_1 = arith.constant 0 : i32
    return %c0_i32, %c0_i32_0 : i32, i32
  }
  func.func @transform_2(%arg0: i32, %arg1: i32) -> (i32, i32) {
    %c0_i32 = arith.constant 0 : i32
    %c0_i32_0 = arith.constant 0 : i32
    %c0_i32_1 = arith.constant 0 : i32
    return %c0_i32, %c0_i32_0 : i32, i32
  }
  func.func @transform_3(%arg0: i32, %arg1: i32) -> (i32, i32) {
    %c0_i32 = arith.constant 0 : i32
    %c0_i32_0 = arith.constant 0 : i32
    %c0_i32_1 = arith.constant 0 : i32
    return %c0_i32, %c0_i32_0 : i32, i32
  }
  func.func @transform_4(%arg0: i32, %arg1: i32) -> (i32, i32) {
    %c0_i32 = arith.constant 0 : i32
    %c0_i32_0 = arith.constant 0 : i32
    %c0_i32_1 = arith.constant 0 : i32
    return %c0_i32, %c0_i32_0 : i32, i32
  }
  func.func @transform_5(%arg0: i32, %arg1: i32) -> (i32, i32) {
    %c0_i32 = arith.constant 0 : i32
    %c0_i32_0 = arith.constant 0 : i32
    %c0_i32_1 = arith.constant 0 : i32
    return %c0_i32, %c0_i32_0 : i32, i32
  }
  func.func @transform_6(%arg0: i32, %arg1: i32) -> (i32, i32) {
    %c0_i32 = arith.constant 0 : i32
    %c0_i32_0 = arith.constant 0 : i32
    return %arg0, %c0_i32 : i32, i32
  }
}

</mosaic_0001>

<bundles_post_ra>
// kernel: tpu_custom_call.1
= control target key start
LH: loop header
LB: loop body
LE: loop exit
PB: predicated region body
PF: predicated region fallthrough
CT: control target
= control target key end

     0   :  { %s3613_s0 = inlined_call_operand.hbm [shape: bf16[512,512], index: 0, kind: input, shape index: {}]   ;;  %s3614_s1 = inlined_call_operand.hbm [shape: bf16[512,128], index: 1, kind: input, shape index: {}]   ;;  %s3615_s2 = inlined_call_operand.hbm [shape: bf16[128,128], index: 2, kind: input, shape index: {}]   ;;  %s3616_s3 = inlined_call_operand.vmem [shape: f32[1,128], index: 3, kind: input, shape index: {}]   ;;  %s3617_s4 = inlined_call_operand.hbm [shape: bf16[128,128], index: 4, kind: input, shape index: {}]   ;;  %s3618_s5 = inlined_call_operand.vmem [shape: f32[1,128], index: 5, kind: input, shape index: {}]   ;;  %s3619_s6 = inlined_call_operand.hbm [shape: bf16[512,128], index: 6, kind: output, shape index: {}]  }
   0x1   :  { %3621 = sst [smem:[#allocation17_spill]] %s3614_s1 }
   0x2   :  { %3622 = sst [smem:[#allocation18_spill]] %s3615_s2 }
   0x3   :  { %3623 = sst [smem:[#allocation19_spill]] %s3617_s4 }
   0x4   :  { %11 = vsyncpa [#allocation4], 0 }
   0x5   :  { %13 = vsyncpa [#allocation4 + $0x1], 0 }
   0x6   :  { %14 = vsyncpa [#allocation7], 0 }
   0x7   :  { %15 = vsyncpa [#allocation10], 0 }
   0x8   :  { %16 = vsyncpa [#allocation5], 0 }
   0x9   :  { %18 = vsyncpa [#allocation5 + $0x1], 0  ;;  %s3172_s21 = smov 0   ;;  %s3174_s22 = smov 0  }
   0xa   :  { %s3176_s23 = smov 0   ;;  %s3178_s24 = smov 0  }
   0xb   :  { %s3180_s25 = smov 0   ;;  %s3182_s26 = smov 0  }
   0xc LB: > { %s2119_s27 = sadd.s32 4294967295, %s3126_s26   ;;  %s2120_s28 = sadd.s32 4294967294, %s3126_s26   ;;  %s3126_s26 = sphi %s3182_s26, %s24_s26   ;;  %s3122_s25 = sphi %s3180_s25, %s3641_s25   ;;  %s3118_s24 = sphi %s3178_s24, %s3640_s24   ;;  %s3114_s23 = sphi %s3176_s23, %s3639_s23   ;;  %s3110_s22 = sphi %s3174_s22, %s3638_s22   ;;  %s3106_s21 = sphi %s3172_s21, %s3637_s21  }
   0xd   : > { %p58_p0 = scmp.ne.s32.totalorder %s3110_s22, %s3106_s21  ;;  %p3206_p1 = scmp.eq.s32.totalorder %s2119_s27, 0 }
   0xe   : > { %p3210_p2 = scmp.eq.s32.totalorder %s2119_s27, 1  ;;  %p193_p3 = scmp.eq.s32.totalorder %s2120_s28, 1 }
   0xf   : > { %p3216_p4 = por %p3206_p1, %p58_p0  ;;  %p2121_p5 = scmp.ge.s32.totalorder %s3126_s26, 1 }
  0x10   : > { %p3221_p6 = por %p193_p3, %p58_p0  ;;  %p200_p7 = scmp.lt.s32.totalorder %s3126_s26, 3 }
  0x11   : > { %s3628_s1 = sld [smem:[#allocation17_spill]]  ;;  %s3128_s13 = smov [#allocation6]  }
  0x12   : > { %p3229_p8 = pnand %p2121_p5, %p200_p7  ;;  %s213_s14 = sshll.u32 %s3128_s13, 4  ;;  %s214_s14 = int_to_ptr.vmem [resolvable:$true] %s213_s14 }
  0x13   : > { %p2125_p11 = scmp.ge.s32.totalorder %s3126_s26, 2  ;;  %s3631_s2 = sld [smem:[#allocation18_spill]] }
  0x14   : > { %p2831_p9 = pneg %p3229_p8  ;;  %s3129_s19 = smov 64  }
  0x15   : > { %s3130_s20 = smov 4   ;;  %s3131_s27 = smov [#allocation8]  }
  0x16   : > { %p3237_p10 = pnand %p2831_p9, %p3206_p1  ;;  %s227_s28 = sshll.u32 %s3131_s27, 4  ;;  %s228_s28 = int_to_ptr.vmem [resolvable:$true] %s227_s28 }
  0x17   : > { %s211_s11 = sshll.u32 %s3628_s1, 4  ;;  %s3632_s4 = sld [smem:[#allocation19_spill]]  ;;  %s212_s11 = int_to_ptr.hbm [resolvable:$true] %s211_s11 }
  0x18   : > { %2834 = dma.hbm_to_vmem [thread:$0]  (!%p3237_p10), %s212_s11, 4096, %s214_s14, [#allocation7], %s3129_s19, %s3129_s19, %s3130_s20  }
  0x19   : > { %s225_s18 = sshll.u32 %s3631_s2, 4  ;;  %s3132_s16 = smov [#allocation9]   ;;  %s226_s18 = int_to_ptr.hbm [resolvable:$true] %s225_s18 }
  0x1a   : > { %2837 = dma.hbm_to_vmem [thread:$0]  (!%p3237_p10), %s226_s18, 1024, %s228_s28, [#allocation7], %s3129_s19, %s3129_s19, %s3130_s20  }
  0x1b   : > { %s244_s17 = sshll.u32 %s3132_s16, 4  ;;  %s36_s11 = sadd.s32 1, %s3122_s25  ;;  %s245_s17 = int_to_ptr.vmem [resolvable:$true] %s244_s17 }
  0x1c   : > { %p38_p12 = scmp.ge.s32.totalorder %s36_s11, 2  ;;  %s45_s14 = sadd.s32 1, %s3114_s23 }
  0x1d   : > { %s242_s13 = sshll.u32 %s3632_s4, 4  ;;  %p52_p13 = scmp.ne.s32.totalorder %s3114_s23, %s3110_s22  ;;  %s243_s13 = int_to_ptr.hbm [resolvable:$true] %s242_s13 }
  0x1e   : > { %2840 = dma.hbm_to_vmem [thread:$0]  (!%p3237_p10), %s243_s13, 1024, %s245_s17, [#allocation10], %s3129_s19, %s3129_s19, %s3130_s20  }
  0x1f   : > { %p53_p0 = scmp.eq.s32.totalorder %s3126_s26, 0  ;;  %s3643_s11 = smov (%p38_p12, %s36_s11), 0 }
  0x20   : > { %3633 = sst [smem:[#allocation16_spill]] %s3643_s11  ;;  %p3267_p5 = por %p3210_p2, %p52_p13 }
  0x21   : > { %p3261_p3 = por %p53_p0, %p52_p13  ;;  %s40_s15 = ssub.s32 %s3122_s25, %s3643_s11 }
  0x22   : > { %p2852_p7 = scmp.lt.s32.totalorder %s3126_s26, 2  ;;  %p43_p9 = scmp.eq.s32.totalorder %s40_s15, 0 }
  0x23   : > { %s261_s19 = sand.u32 1, %s3114_s23   ;;  %s2590_s9 = sshll.u32 %s3122_s25, 9 }
  0x24   : > { %s2126_s20 = sshll.u32 %s261_s19, 9  ;;  %s273_s16 = scalar_lea.hbm %s3613_s0, %s2590_s9 }
  0x25   : > { %s3276_s28 = scalar_select %p43_p9, %s3114_s23, %s45_s14  }
  0x26   : > { %s265_s17 = scalar_lea.vmem [#allocation3], %s2126_s20  ;;  %s274_s30 = sshll.u32 %s273_s16, 4  ;;  %s275_s30 = int_to_ptr.hbm [resolvable:$true] %s274_s30 }
  0x27   : > { %s276_s1 = sshll.u32 %s265_s17, 4  ;;  %p2842_p2 = pnand %p2852_p7, %p3261_p3  ;;  %s277_s1 = int_to_ptr.vmem [resolvable:$true] %s276_s1 }
  0x28   : > { %s262_s2 = scalar_lea.sflag [#allocation4], %s261_s19  ;;  %s3133_s4 = smov 256  }
  0x29   : > { %s3134_s11 = smov 16   ;;  %288 = sbr.rel (%p3229_p8) target bundleno = 881 (0x371), region = 44 }
  0x2a   : > { %2844 = dma.hbm_to_vmem [thread:$0]  (!%p2842_p2), %s275_s30, 8192, %s277_s1, %s262_s2, %s3133_s4, %s3133_s4, %s3134_s11  }
  0x2b   : > { %s3287_s14 = sand.u32 (!%p3229_p8), 1, %s3110_s22  }
  0x2c   : > { %s2131_s15 = sshll.u32 (!%p3229_p8), %s3287_s14, 9  ;;  %s291_s20 = scalar_lea.sflag (!%p3229_p8), [#allocation4], %s3287_s14 }
  0x2d   : > { %s3291_s9 = scalar_lea.vmem (!%p3229_p8), [#allocation3], %s2131_s15 }
  0x2e   : > { %3089 = dma.done.wait (%p3216_p4), %s291_s20, 8192  }
  0x2f   : > { %3091 = vsyncadd (%p3216_p4), %s291_s20, 4294959104 }
  0x30   : > { %3093 = dma.done.wait (%p3206_p1), [#allocation7], 5120  }
  0x31   : > { %3095 = vsyncadd (%p3206_p1), [#allocation7], 4294962176 }
  0x32   : > { %3097 = dma.done.wait (%p3206_p1), [#allocation10], 1024  }
  0x33   : > { %3099 = vsyncadd (%p3206_p1), [#allocation10], 4294966272  ;;  %v2662_v0 = vld [vmem:[#allocation6 + $0x38] sm:$0xff]  ;;  %v2661_v2 = vld [vmem:[#allocation6 + $0x30] sm:$0xff]  ;;  %s2135_s7 = sshll.u32 %s3287_s14, 7  ;;  %s2703_s11 = sshll.u32 %s3118_s24, 7 }
  0x34   : > { %v2670_v1 = vld [vmem:[#allocation6 + $0x78] sm:$0xff]  ;;  %2799 = vmatpush.bf16.msra.mxu2 %v2662_v0  ;;  %v2669_v3 = vld [vmem:[#allocation6 + $0x70] sm:$0xff]  ;;  %987 = vmatpush.bf16.msra.mxu0 %v2662_v0  ;;  %v2660_v4 = vld [vmem:[#allocation6 + $0x28] sm:$0xff]  ;;  %s3514_s12 = scalar_lea.vmem [#allocation11], %s2135_s7  ;;  %s2000_s10 = scalar_lea.hbm %s3619_s6, %s2703_s11 }
  0x35   : > { %2807 = vmatpush.bf16.msra.mxu3 %v2670_v1  ;;  %1076 = vmatpush.bf16.msra.mxu1 %v2670_v1  ;;  %v2668_v5 = vld [vmem:[#allocation6 + $0x68] sm:$0xff]  ;;  %v2659_v6 = vld [vmem:[#allocation6 + $0x20] sm:$0xff]  ;;  %v2658_v8 = vld [vmem:[#allocation6 + $0x18] sm:$0xff]  ;;  %s2001_s13 = sshll.u32 %s3514_s12, 4  ;;  %s2003_s16 = sshll.u32 %s2000_s10, 4  ;;  %s2002_s13 = int_to_ptr.vmem [resolvable:$true] %s2001_s13  ;;  %s2004_s16 = int_to_ptr.hbm [resolvable:$true] %s2003_s16 }
  0x36   : > { %v2667_v7 = vld [vmem:[#allocation6 + $0x60] sm:$0xff]  ;;  %v2666_v9 = vld [vmem:[#allocation6 + $0x58] sm:$0xff]  ;;  %v2657_v10 = vld [vmem:[#allocation6 + $0x10] sm:$0xff]  ;;  %s1989_s17 = scalar_lea.sflag [#allocation5], %s3287_s14  ;;  %s3050_s24 = sshra.s32 %s2004_s16, 4  ;;  %s3051_s24 = int_to_ptr.hbm [resolvable:$true] %s3050_s24 }
  0x37   : > { %v2665_v11 = vld [vmem:[#allocation6 + $0x50] sm:$0xff]  ;;  %v2656_v12 = vld [vmem:[#allocation6 + $0x8] sm:$0xff]  ;;  %v2655_v14 = vld [vmem:[#allocation6] sm:$0xff]  ;;  %s3052_s30 = scalar_lea.hbm %s3051_s24, 128  ;;  %p3057_p10 = scmp.lt.s32.totalorder %s3051_s24, %s3619_s6 }
  0x38   : > { %2800 = vmatpush.bf16.msra.mxu2 %v2661_v2  ;;  %988 = vmatpush.bf16.msra.mxu0 %v2661_v2  ;;  %v2664_v13 = vld [vmem:[#allocation6 + $0x48] sm:$0xff]  ;;  %v2663_v15 = vld [vmem:[#allocation6 + $0x40] sm:$0xff]  ;;  %v2625_v17 = vld [vmem:[%s3291_s9 + $0x10c] sm:$0xf0]  ;;  %p3053_p1 = scmp.ne.s32.totalorder %s3051_s24, %s3052_s30 }
  0x39   : > { %2808 = vmatpush.bf16.msra.mxu3 %v2669_v3  ;;  %1077 = vmatpush.bf16.msra.mxu1 %v2669_v3  ;;  %v2266_v16 = vld [vmem:[%s3291_s9 + $0x100] sm:$0xf]  ;;  %v2623_v18 = vld [vmem:[%s3291_s9 + $0x104] sm:$0xf]  ;;  %v2268_v19 = vld [vmem:[%s3291_s9 + $0x110] sm:$0xf0] }
  0x3a   : > { %v2678_v20 = vld [vmem:[#allocation6 + $0xb8] sm:$0xff]  ;;  %v2267_v22 = vor.u32 %v2625_v17, %v2266_v16  ;;  %v2271_v23 = vor.u32 %v2623_v18, %v2268_v19  ;;  %v2677_v24 = vld [vmem:[#allocation6 + $0xb0] sm:$0xff]  ;;  %v2676_v26 = vld [vmem:[#allocation6 + $0xa8] sm:$0xff]  ;;  %p3054_p4 = pnand %p3053_p1, %p3267_p5 }
  0x3b   : > { %v2686_v21 = vld [vmem:[#allocation6 + $0xf8] sm:$0xff]  ;;  %v2685_v25 = vld [vmem:[#allocation6 + $0xf0] sm:$0xff]  ;;  %v2684_v27 = vld [vmem:[#allocation6 + $0xe8] sm:$0xff] }
  0x3c   : > { %2801 = vmatpush.bf16.msra.mxu2 %v2660_v4  ;;  %989 = vmatpush.bf16.msra.mxu0 %v2660_v4  ;;  %v2282_v28 = vld [vmem:[%s3291_s9 + $0x120] sm:$0xf]  ;;  %v2629_v29 = vld [vmem:[%s3291_s9 + $0x12c] sm:$0xf0]  ;;  %v2627_v30 = vld [vmem:[%s3291_s9 + $0x124] sm:$0xf]  ;;  %p3055_p8 = pneg %p3054_p4 }
  0x3d   : > { %2809 = vmatpush.bf16.msra.mxu3 %v2668_v5  ;;  %1078 = vmatpush.bf16.msra.mxu1 %v2668_v5  ;;  %v2284_v31 = vld [vmem:[%s3291_s9 + $0x130] sm:$0xf0]  ;;  %v2283_v32 = vor.u32 %v2629_v29, %v2282_v28  ;;  %v2675_v34 = vld [vmem:[#allocation6 + $0xa0] sm:$0xff]  ;;  %v2633_v37 = vld [vmem:[%s3291_s9 + $0x14c] sm:$0xf0] }
  0x3e   : > { %v2287_v33 = vor.u32 %v2627_v30, %v2284_v31  ;;  %v2683_v35 = vld [vmem:[#allocation6 + $0xe0] sm:$0xff]  ;;  %v2300_v39 = vld [vmem:[%s3291_s9 + $0x150] sm:$0xf0]  ;;  %v2674_v42 = vld [vmem:[#allocation6 + $0x98] sm:$0xff] }
  0x3f   : > { %v2298_v36 = vld [vmem:[%s3291_s9 + $0x140] sm:$0xf]  ;;  %v2631_v38 = vld [vmem:[%s3291_s9 + $0x144] sm:$0xf]  ;;  %v2682_v43 = vld [vmem:[#allocation6 + $0xd8] sm:$0xff] }
  0x40   : > { %2802 = vmatpush.bf16.msra.mxu2 %v2659_v6  ;;  %990 = vmatpush.bf16.msra.mxu0 %v2659_v6  ;;  %v2299_v40 = vor.u32 %v2633_v37, %v2298_v36  ;;  %v2303_v41 = vor.u32 %v2631_v38, %v2300_v39  ;;  %v2314_v44 = vld [vmem:[%s3291_s9 + $0x160] sm:$0xf]  ;;  %v2637_v45 = vld [vmem:[%s3291_s9 + $0x16c] sm:$0xf0]  ;;  %v2635_v46 = vld [vmem:[%s3291_s9 + $0x164] sm:$0xf] }
  0x41   : > { %2810 = vmatpush.bf16.msra.mxu3 %v2667_v7  ;;  %1079 = vmatpush.bf16.msra.mxu1 %v2667_v7  ;;  %v2316_v47 = vld [vmem:[%s3291_s9 + $0x170] sm:$0xf0]  ;;  %v2315_v48 = vor.u32 %v2637_v45, %v2314_v44  ;;  %v2330_v52 = vld [vmem:[%s3291_s9 + $0x180] sm:$0xf]  ;;  %v2641_v53 = vld [vmem:[%s3291_s9 + $0x18c] sm:$0xf0] }
  0x42   : > { %v2319_v49 = vor.u32 %v2635_v46, %v2316_v47  ;;  %v2673_v50 = vld [vmem:[#allocation6 + $0x90] sm:$0xff]  ;;  %v2639_v54 = vld [vmem:[%s3291_s9 + $0x184] sm:$0xf]  ;;  %v2331_v56 = vor.u32 %v2641_v53, %v2330_v52  ;;  %v2672_v58 = vld [vmem:[#allocation6 + $0x88] sm:$0xff] }
  0x43   : > { %v2681_v51 = vld [vmem:[#allocation6 + $0xd0] sm:$0xff]  ;;  %v2680_v59 = vld [vmem:[#allocation6 + $0xc8] sm:$0xff]  ;;  %v2346_v60 = vld [vmem:[%s3291_s9 + $0x1a0] sm:$0xf] }
  0x44   : > { %2803 = vmatpush.bf16.msra.mxu2 %v2658_v8  ;;  %991 = vmatpush.bf16.msra.mxu0 %v2658_v8  ;;  %v2332_v55 = vld [vmem:[%s3291_s9 + $0x190] sm:$0xf0]  ;;  %v2645_v61 = vld [vmem:[%s3291_s9 + $0x1ac] sm:$0xf0]  ;;  %v2643_v62 = vld [vmem:[%s3291_s9 + $0x1a4] sm:$0xf] }
  0x45   : > { %2811 = vmatpush.bf16.msra.mxu3 %v2666_v9  ;;  %1080 = vmatpush.bf16.msra.mxu1 %v2666_v9  ;;  %v2335_v57 = vor.u32 %v2639_v54, %v2332_v55  ;;  %v2348_v63 = vld [vmem:[%s3291_s9 + $0x1b0] sm:$0xf0]  ;;  %v2347_v0 = vor.u32 %v2645_v61, %v2346_v60  ;;  %v2671_v2 = vld [vmem:[#allocation6 + $0x80] sm:$0xff]  ;;  %v2593_v5 = vld [vmem:[%s3291_s9 + $0xc] sm:$0xf0] }
  0x46   : > { %v2351_v1 = vor.u32 %v2643_v62, %v2348_v63  ;;  %v2679_v3 = vld [vmem:[#allocation6 + $0xc0] sm:$0xff]  ;;  %v2140_v7 = vld [vmem:[%s3291_s9 + $0x10] sm:$0xf0]  ;;  %v2653_v17 = vld [vmem:[%s3291_s9 + $0x1ec] sm:$0xf0] }
  0x47   : > { %v2138_v4 = vld [vmem:[%s3291_s9] sm:$0xf]  ;;  %v2591_v6 = vld [vmem:[%s3291_s9 + $0x4] sm:$0xf]  ;;  %v2380_v19 = vld [vmem:[%s3291_s9 + $0x1f0] sm:$0xf0] }
  0x48   : > { %2804 = vmatpush.bf16.msra.mxu2 %v2657_v10  ;;  %992 = vmatpush.bf16.msra.mxu0 %v2657_v10  ;;  %v2139_v8 = vor.u32 %v2593_v5, %v2138_v4  ;;  %v2143_v9 = vor.u32 %v2591_v6, %v2140_v7  ;;  %v2362_v10 = vld [vmem:[%s3291_s9 + $0x1c0] sm:$0xf]  ;;  %v2651_v18 = vld [vmem:[%s3291_s9 + $0x1e4] sm:$0xf]  ;;  %v2694_v28 = vld [vmem:[#allocation8 + $0x38] sm:$0xff] }
  0x49   : > { %2812 = vmatpush.bf16.msra.mxu3 %v2665_v11  ;;  %1081 = vmatpush.bf16.msra.mxu1 %v2665_v11  ;;  %v2649_v11 = vld [vmem:[%s3291_s9 + $0x1cc] sm:$0xf0]  ;;  %v2378_v16 = vld [vmem:[%s3291_s9 + $0x1e0] sm:$0xf]  ;;  %v2146_v29 = vld [vmem:[%s3291_s9 + $0x8] sm:$0xf] }
  0x4a   : > { %v2594_v30 = vld [vmem:[%s3291_s9 + $0x14] sm:$0xf0]  ;;  %v2592_v31 = vld [vmem:[%s3291_s9 + $0xc] sm:$0xf]  ;;  %v2172_v37 = vld [vmem:[%s3291_s9 + $0x50] sm:$0xf0] }
  0x4b   : > { %v2147_v39 = vor.u32 %v2594_v30, %v2146_v29  ;;  %v2162_v45 = vld [vmem:[%s3291_s9 + $0x28] sm:$0xf]  ;;  %v2598_v46 = vld [vmem:[%s3291_s9 + $0x34] sm:$0xf0]  ;;  %v2596_v47 = vld [vmem:[%s3291_s9 + $0x2c] sm:$0xf] }
  0x4c   : > { %2805 = vmatpush.bf16.msra.mxu2 %v2656_v12  ;;  %993 = vmatpush.bf16.msra.mxu0 %v2656_v12  ;;  %v2647_v12 = vld [vmem:[%s3291_s9 + $0x1c4] sm:$0xf]  ;;  %v2188_v53 = vld [vmem:[%s3291_s9 + $0x70] sm:$0xf0]  ;;  %v2692_v60 = vld [vmem:[#allocation8 + $0x28] sm:$0xff] }
  0x4d   : > { %2813 = vmatpush.bf16.msra.mxu3 %v2664_v13  ;;  %1082 = vmatpush.bf16.msra.mxu1 %v2664_v13  ;;  %v2364_v13 = vld [vmem:[%s3291_s9 + $0x1d0] sm:$0xf0]  ;;  %v2202_v4 = vld [vmem:[%s3291_s9 + $0x80] sm:$0xf]  ;;  %v2609_v5 = vld [vmem:[%s3291_s9 + $0x8c] sm:$0xf0] }
  0x4e   : > { %v2607_v6 = vld [vmem:[%s3291_s9 + $0x84] sm:$0xf]  ;;  %v2203_v7 = vor.u32 %v2609_v5, %v2202_v4  ;;  %v2252_v4 = vld [vmem:[%s3291_s9 + $0xf0] sm:$0xf0] }
  0x50   : > { %2806 = vmatpush.bf16.msra.mxu2 %v2655_v14  ;;  %994 = vmatpush.bf16.msra.mxu0 %v2655_v14  ;;  %v2363_v14 = vor.u32 %v2649_v11, %v2362_v10 }
  0x51   : > { %2814 = vmatpush.bf16.msra.mxu3 %v2663_v15  ;;  %1083 = vmatpush.bf16.msra.mxu1 %v2663_v15  ;;  %v2367_v15 = vor.u32 %v2647_v12, %v2364_v13 }
  0x53   : > { %1035 = vmatmul.bf16.vlgmr.msra.gmra.mxu2 %v2267_v22  ;;  %995 = vmatmul.bf16.vlgmr.msra.gmra.mxu0 %v2139_v8  ;;  %v2595_v22 = vld [vmem:[%s3291_s9 + $0x24] sm:$0xf]  ;;  %v2204_v8 = vld [vmem:[%s3291_s9 + $0x90] sm:$0xf0] }
  0x54   : > { %1165 = vmatpush.bf16.msrb.mxu2 %v2678_v20  ;;  %1124 = vmatmul.bf16.vlgmr.msra.gmra.mxu3 %v2271_v23  ;;  %v2154_v20 = vld [vmem:[%s3291_s9 + $0x20] sm:$0xf]  ;;  %v2207_v11 = vor.u32 %v2607_v6, %v2204_v8 }
  0x55   : > { %1254 = vmatpush.bf16.msrb.mxu3 %v2686_v21  ;;  %1084 = vmatmul.bf16.vlgmr.msra.gmra.mxu1 %v2143_v9  ;;  %v2597_v21 = vld [vmem:[%s3291_s9 + $0x2c] sm:$0xf0] }
  0x56   : > { %v2155_v23 = vor.u32 %v2597_v21, %v2154_v20  ;;  %1598 = vmatpush.bf16.msrb.mxu0 %v2694_v28  ;;  %v2606_v20 = vld [vmem:[%s3291_s9 + $0x74] sm:$0xf0]  ;;  %v2604_v21 = vld [vmem:[%s3291_s9 + $0x6c] sm:$0xf] }
  0x58   : > { %1166 = vmatpush.bf16.msrb.mxu2 %v2677_v24  ;;  %v2156_v24 = vld [vmem:[%s3291_s9 + $0x30] sm:$0xf0] }
  0x59   : > { %1255 = vmatpush.bf16.msrb.mxu3 %v2685_v25  ;;  %v2159_v25 = vor.u32 %v2595_v22, %v2156_v24  ;;  %v2196_v22 = vld [vmem:[%s3291_s9 + $0x78] sm:$0xf0]  ;;  %v2613_v24 = vld [vmem:[%s3291_s9 + $0xac] sm:$0xf0] }
  0x5c   : > { %1167 = vmatpush.bf16.msrb.mxu2 %v2676_v26  ;;  %v2379_v26 = vor.u32 %v2653_v17, %v2378_v16 }
  0x5d   : > { %1256 = vmatpush.bf16.msrb.mxu3 %v2684_v27  ;;  %v2383_v27 = vor.u32 %v2651_v18, %v2380_v19  ;;  %v2194_v19 = vld [vmem:[%s3291_s9 + $0x68] sm:$0xf] }
  0x60   : > { %1168 = vmatpush.bf16.msrb.mxu2 %v2675_v34  ;;  %v2601_v34 = vld [vmem:[%s3291_s9 + $0x4c] sm:$0xf0] }
  0x61   : > { %1257 = vmatpush.bf16.msrb.mxu3 %v2683_v35  ;;  %v2599_v35 = vld [vmem:[%s3291_s9 + $0x44] sm:$0xf] }
  0x62   : > { %v2175_v38 = vor.u32 %v2599_v35, %v2172_v37 }
  0x63   : > { %1040 = vmatmul.bf16.gmra.mxu2 %v2283_v32  ;;  %1000 = vmatmul.bf16.gmra.mxu0 %v2155_v23  ;;  %v2148_v32 = vld [vmem:[%s3291_s9 + $0x18] sm:$0xf0]  ;;  %v2218_v23 = vld [vmem:[%s3291_s9 + $0xa0] sm:$0xf] }
  0x64   : > { %1129 = vmatmul.bf16.gmra.mxu3 %v2287_v33  ;;  %1169 = vmatpush.bf16.msrb.mxu2 %v2674_v42  ;;  %v2170_v33 = vld [vmem:[%s3291_s9 + $0x40] sm:$0xf] }
  0x65   : > { %1258 = vmatpush.bf16.msrb.mxu3 %v2682_v43  ;;  %1089 = vmatmul.bf16.gmra.mxu1 %v2159_v25  ;;  %v2171_v36 = vor.u32 %v2601_v34, %v2170_v33  ;;  %v2611_v25 = vld [vmem:[%s3291_s9 + $0xa4] sm:$0xf]  ;;  %v2199_v33 = vor.u32 %v2604_v21, %v2196_v22  ;;  %v2690_v34 = vld [vmem:[#allocation8 + $0x18] sm:$0xff] }
  0x68   : > { %1170 = vmatpush.bf16.msrb.mxu2 %v2673_v50  ;;  %v2605_v50 = vld [vmem:[%s3291_s9 + $0x6c] sm:$0xf0] }
  0x69   : > { %1259 = vmatpush.bf16.msrb.mxu3 %v2681_v51  ;;  %v2603_v51 = vld [vmem:[%s3291_s9 + $0x64] sm:$0xf] }
  0x6c   : > { %1171 = vmatpush.bf16.msrb.mxu2 %v2672_v58  ;;  %v2163_v58 = vor.u32 %v2598_v46, %v2162_v45  ;;  %v2615_v45 = vld [vmem:[%s3291_s9 + $0xc4] sm:$0xf] }
  0x6d   : > { %1260 = vmatpush.bf16.msrb.mxu3 %v2680_v59 }
  0x70   : > { %1172 = vmatpush.bf16.msrb.mxu2 %v2671_v2  ;;  %v2600_v2 = vld [vmem:[%s3291_s9 + $0x4c] sm:$0xf] }
  0x71   : > { %1261 = vmatpush.bf16.msrb.mxu3 %v2679_v3  ;;  %v2180_v3 = vld [vmem:[%s3291_s9 + $0x58] sm:$0xf0] }
  0x73   : > { %1045 = vmatmul.bf16.gmra.mxu2 %v2299_v40  ;;  %v2151_v40 = vor.u32 %v2592_v31, %v2148_v32  ;;  %1005 = vmatmul.bf16.gmra.mxu0 %v2171_v36  ;;  %v2195_v32 = vor.u32 %v2606_v20, %v2194_v19  ;;  %v2616_v19 = vld [vmem:[%s3291_s9 + $0xcc] sm:$0xf]  ;;  %v2244_v20 = vld [vmem:[%s3291_s9 + $0xd8] sm:$0xf0] }
  0x74   : > { %1134 = vmatmul.bf16.gmra.mxu3 %v2303_v41  ;;  %v2693_v41 = vld [vmem:[#allocation8 + $0x30] sm:$0xff] }
  0x75   : > { %1094 = vmatmul.bf16.gmra.mxu1 %v2175_v38  ;;  %1599 = vmatpush.bf16.msrb.mxu0 %v2693_v41  ;;  %v2210_v38 = vld [vmem:[%s3291_s9 + $0x88] sm:$0xf]  ;;  %v2212_v41 = vld [vmem:[%s3291_s9 + $0x98] sm:$0xf0] }
  0x79   : > { %1600 = vmatpush.bf16.msrb.mxu0 %v2692_v60  ;;  %v2614_v60 = vld [vmem:[%s3291_s9 + $0xb4] sm:$0xf0] }
  0x83   : > { %1050 = vmatmul.bf16.gmra.mxu2 %v2315_v48  ;;  %v2164_v48 = vld [vmem:[%s3291_s9 + $0x38] sm:$0xf0] }
  0x84   : > { %1139 = vmatmul.bf16.gmra.mxu3 %v2319_v49  ;;  %v2186_v49 = vld [vmem:[%s3291_s9 + $0x60] sm:$0xf]  ;;  %v2167_v59 = vor.u32 %v2596_v47, %v2164_v48  ;;  %v2236_v47 = vld [vmem:[%s3291_s9 + $0xd0] sm:$0xf0] }
  0x85   : > { %v2187_v52 = vor.u32 %v2605_v50, %v2186_v49  ;;  %v2239_v50 = vor.u32 %v2615_v45, %v2236_v47 }
  0x87   : > { %1010 = vmatmul.bf16.gmra.mxu0 %v2187_v52 }
  0x93   : > { %1055 = vmatmul.bf16.gmra.mxu2 %v2331_v56  ;;  %v2191_v56 = vor.u32 %v2603_v51, %v2188_v53 }
  0x94   : > { %1144 = vmatmul.bf16.gmra.mxu3 %v2335_v57 }
  0x95   : > { %1099 = vmatmul.bf16.gmra.mxu1 %v2191_v56 }
  0x97   : > { %1015 = vmatmul.bf16.gmra.mxu0 %v2203_v7 }
  0xa3   : > { %1060 = vmatmul.bf16.gmra.mxu2 %v2347_v0  ;;  %v2178_v0 = vld [vmem:[%s3291_s9 + $0x48] sm:$0xf] }
  0xa4   : > { %1149 = vmatmul.bf16.gmra.mxu3 %v2351_v1  ;;  %v2602_v1 = vld [vmem:[%s3291_s9 + $0x54] sm:$0xf0] }
  0xa5   : > { %v2179_v13 = vor.u32 %v2602_v1, %v2178_v0  ;;  %1104 = vmatmul.bf16.gmra.mxu1 %v2207_v11  ;;  %v2250_v0 = vld [vmem:[%s3291_s9 + $0xe0] sm:$0xf]  ;;  %v2621_v1 = vld [vmem:[%s3291_s9 + $0xec] sm:$0xf0]  ;;  %v2688_v11 = vld [vmem:[#allocation8 + $0x8] sm:$0xff] }
  0xb3   : > { %1065 = vmatmul.bf16.gmra.mxu2 %v2363_v14  ;;  %v2183_v14 = vor.u32 %v2600_v2, %v2180_v3  ;;  %v2619_v2 = vld [vmem:[%s3291_s9 + $0xe4] sm:$0xf]  ;;  %v2251_v3 = vor.u32 %v2621_v1, %v2250_v0 }
  0xb4   : > { %1154 = vmatmul.bf16.gmra.mxu3 %v2367_v15  ;;  %v2691_v15 = vld [vmem:[#allocation8 + $0x20] sm:$0xff]  ;;  %v2255_v7 = vor.u32 %v2619_v2, %v2252_v4  ;;  %v2702_v2 = vld [vmem:[#allocation9 + $0x38] sm:$0xff] }
  0xb5   : > { %1601 = vmatpush.bf16.msrb.mxu0 %v2691_v15  ;;  %1803 = vmatpush.bf16.msrb.mxu1 %v2702_v2  ;;  %v2322_v2 = vld [vmem:[%s3291_s9 + $0x168] sm:$0xf] }
  0xb9   : > { %1602 = vmatpush.bf16.msrb.mxu0 %v2690_v34  ;;  %v2622_v34 = vld [vmem:[%s3291_s9 + $0xf4] sm:$0xf0] }
  0xc3   : > { %1070 = vmatmul.bf16.gmra.mxu2 %v2379_v26  ;;  %v2219_v26 = vor.u32 %v2613_v24, %v2218_v23 }
  0xc4   : > { %1159 = vmatmul.bf16.gmra.mxu3 %v2383_v27  ;;  %v2220_v27 = vld [vmem:[%s3291_s9 + $0xb0] sm:$0xf0] }
  0xc5   : > { %v2223_v30 = vor.u32 %v2611_v25, %v2220_v27  ;;  %1020 = vmatmul.bf16.gmra.mxu0 %v2219_v26  ;;  %v2247_v25 = vor.u32 %v2616_v19, %v2244_v20 }
  0xc7   : > { %1109 = vmatmul.bf16.gmra.mxu1 %v2223_v30 }
  0xd0   : > { %v996_v26 = vpop.f32.mrf.mxu0 }
  0xd2   : > { %v1085_v27 = vpop.f32.mrf.mxu1 }
  0xd3   : > { %1173 = vmatmul.bf16.vlgmr.msrb.gmra.mxu2 %v2147_v39  ;;  %v2610_v39 = vld [vmem:[%s3291_s9 + $0x94] sm:$0xf0] }
  0xd4   : > { %1262 = vmatmul.bf16.vlgmr.msrb.gmra.mxu3 %v2151_v40  ;;  %v2608_v40 = vld [vmem:[%s3291_s9 + $0x8c] sm:$0xf]  ;;  %v2211_v52 = vor.u32 %v2610_v39, %v2210_v38 }
  0xd5   : > { %v2215_v53 = vor.u32 %v2608_v40, %v2212_v41 }
  0xd6   : > { %v1036_v42 = vpop.f32.mrf.mxu2 }
  0xd7   : > { %v1125_v43 = vpop.f32.mrf.mxu3  ;;  %1114 = vmatmul.bf16.gmra.mxu1 %v2239_v50 }
  0xd8   : > { %v3353_v44 = vadd.f32 %v1125_v43, %v1036_v42  ;;  %v2234_v42 = vld [vmem:[%s3291_s9 + $0xc0] sm:$0xf]  ;;  %v2617_v43 = vld [vmem:[%s3291_s9 + $0xcc] sm:$0xf0]  ;;  %v998_v38 = vpop.f32.mrf.mxu0 }
  0xd9   : > { %v2235_v46 = vor.u32 %v2617_v43, %v2234_v42 }
  0xda   : > { %v1087_v39 = vpop.f32.mrf.mxu1 }
  0xdb   : > { %1025 = vmatmul.bf16.gmra.mxu0 %v2235_v46 }
  0xde   : > { %v1038_v54 = vpop.f32.mrf.mxu2 }
  0xdf   : > { %v1127_v55 = vpop.f32.mrf.mxu3 }
  0xe0   : > { %v3363_v57 = vadd.f32 %v1127_v55, %v1038_v54  ;;  %v2689_v54 = vld [vmem:[#allocation8 + $0x10] sm:$0xff] }
  0xe1   : > { %1603 = vmatpush.bf16.msrb.mxu0 %v2689_v54  ;;  %v2624_v54 = vld [vmem:[%s3291_s9 + $0x10c] sm:$0xf] }
  0xe2   : > { %v1090_v50 = vpop.f32.mrf.mxu1 }
  0xe3   : > { %1178 = vmatmul.bf16.gmra.mxu2 %v2163_v58 }
  0xe4   : > { %1267 = vmatmul.bf16.gmra.mxu3 %v2167_v59  ;;  %v2226_v59 = vld [vmem:[%s3291_s9 + $0xa8] sm:$0xf] }
  0xe5   : > { %1604 = vmatpush.bf16.msrb.mxu0 %v2688_v11  ;;  %v2628_v11 = vld [vmem:[%s3291_s9 + $0x12c] sm:$0xf] }
  0xe6   : > { %v1041_v61 = vpop.f32.mrf.mxu2 }
  0xe7   : > { %v1130_v62 = vpop.f32.mrf.mxu3  ;;  %1119 = vmatmul.bf16.gmra.mxu1 %v2255_v7 }
  0xe8   : > { %v3365_v63 = vadd.f32 %v1130_v62, %v1041_v61  ;;  %v2612_v61 = vld [vmem:[%s3291_s9 + $0xac] sm:$0xf]  ;;  %v2228_v62 = vld [vmem:[%s3291_s9 + $0xb8] sm:$0xf0] }
  0xea   : > { %v1092_v1 = vpop.f32.mrf.mxu1 }
  0xeb   : > { %1030 = vmatmul.bf16.gmra.mxu0 %v2251_v3 }
  0xee   : > { %v1043_v9 = vpop.f32.mrf.mxu2 }
  0xef   : > { %v1132_v10 = vpop.f32.mrf.mxu3 }
  0xf0   : > { %v3375_v12 = vadd.f32 %v1132_v10, %v1043_v9  ;;  %v2227_v9 = vor.u32 %v2614_v60, %v2226_v59  ;;  %v2231_v10 = vor.u32 %v2612_v61, %v2228_v62 }
  0xf3   : > { %1183 = vmatmul.bf16.gmra.mxu2 %v2179_v13 }
  0xf4   : > { %1272 = vmatmul.bf16.gmra.mxu3 %v2183_v14 }
  0xf6   : > { %v1046_v16 = vpop.f32.mrf.mxu2 }
  0xf7   : > { %v1135_v17 = vpop.f32.mrf.mxu3 }
  0xf8   : > { %v3377_v18 = vadd.f32 %v1135_v17, %v1046_v16  ;;  %v2242_v16 = vld [vmem:[%s3291_s9 + $0xc8] sm:$0xf]  ;;  %v2618_v17 = vld [vmem:[%s3291_s9 + $0xd4] sm:$0xf0] }
  0xf9   : > { %v2243_v24 = vor.u32 %v2618_v17, %v2242_v16 }
  0xfe   : > { %v1048_v28 = vpop.f32.mrf.mxu2 }
  0xff   : > { %v1137_v29 = vpop.f32.mrf.mxu3 }
 0x100   : > { %v3387_v31 = vadd.f32 %v1137_v29, %v1048_v28  ;;  %v2687_v28 = vld [vmem:[#allocation8] sm:$0xff] }
 0x101   : > { %1605 = vmatpush.bf16.msrb.mxu0 %v2687_v28 }
 0x103   : > { %1188 = vmatmul.bf16.gmra.mxu2 %v2195_v32 }
 0x104   : > { %1277 = vmatmul.bf16.gmra.mxu3 %v2199_v33  ;;  %v2258_v33 = vld [vmem:[%s3291_s9 + $0xe8] sm:$0xf] }
 0x105   : > { %v2259_v43 = vor.u32 %v2622_v34, %v2258_v33 }
 0x106   : > { %v1051_v35 = vpop.f32.mrf.mxu2 }
 0x107   : > { %v1140_v36 = vpop.f32.mrf.mxu3 }
 0x108   : > { %v3389_v37 = vadd.f32 %v1140_v36, %v1051_v35  ;;  %v2620_v35 = vld [vmem:[%s3291_s9 + $0xec] sm:$0xf]  ;;  %v2260_v36 = vld [vmem:[%s3291_s9 + $0xf8] sm:$0xf0] }
 0x109   : > { %v2263_v45 = vor.u32 %v2620_v35, %v2260_v36  ;;  %v2306_v35 = vld [vmem:[%s3291_s9 + $0x148] sm:$0xf]  ;;  %v2634_v36 = vld [vmem:[%s3291_s9 + $0x154] sm:$0xf0] }
 0x10e   : > { %v1053_v48 = vpop.f32.mrf.mxu2 }
 0x10f   : > { %v1142_v49 = vpop.f32.mrf.mxu3 }
 0x110   : > { %v3399_v51 = vadd.f32 %v1142_v49, %v1053_v48  ;;  %v1001_v49 = vpop.f32.mrf.mxu0 }
 0x111   : > { %v1091_v34 = vadd.f32 %v1090_v50, %v1001_v49  ;;  %v2700_v49 = vld [vmem:[#allocation9 + $0x28] sm:$0xff] }
 0x113   : > { %1193 = vmatmul.bf16.gmra.mxu2 %v2211_v52  ;;  %v2274_v52 = vld [vmem:[%s3291_s9 + $0x108] sm:$0xf] }
 0x114   : > { %1282 = vmatmul.bf16.gmra.mxu3 %v2215_v53  ;;  %v2626_v53 = vld [vmem:[%s3291_s9 + $0x114] sm:$0xf0] }
 0x115   : > { %v2275_v61 = vor.u32 %v2626_v53, %v2274_v52 }
 0x116   : > { %v1056_v55 = vpop.f32.mrf.mxu2 }
 0x117   : > { %v1145_v56 = vpop.f32.mrf.mxu3 }
 0x118   : > { %v3401_v58 = vadd.f32 %v1145_v56, %v1056_v55  ;;  %v2276_v55 = vld [vmem:[%s3291_s9 + $0x118] sm:$0xf0]  ;;  %v1003_v0 = vpop.f32.mrf.mxu0 }
 0x119   : > { %v2279_v62 = vor.u32 %v2624_v54, %v2276_v55 }
 0x11e   : > { %v1058_v5 = vpop.f32.mrf.mxu2 }
 0x11f   : > { %v1147_v6 = vpop.f32.mrf.mxu3 }
 0x120   : > { %v3411_v8 = vadd.f32 %v1147_v6, %v1058_v5  ;;  %v1086_v5 = vadd.f32 %v1085_v27, %v996_v26  ;;  %v2290_v6 = vld [vmem:[%s3291_s9 + $0x128] sm:$0xf]  ;;  %v1006_v7 = vpop.f32.mrf.mxu0  ;;  %v2701_v26 = vld [vmem:[#allocation9 + $0x30] sm:$0xff] }
 0x121   : > { %1804 = vmatpush.bf16.msrb.mxu1 %v2701_v26 }
 0x123   : > { %1198 = vmatmul.bf16.gmra.mxu2 %v2227_v9  ;;  %v1095_v9 = vpop.f32.mrf.mxu1 }
 0x124   : > { %1287 = vmatmul.bf16.gmra.mxu3 %v2231_v10  ;;  %v2630_v10 = vld [vmem:[%s3291_s9 + $0x134] sm:$0xf0] }
 0x125   : > { %1805 = vmatpush.bf16.msrb.mxu1 %v2700_v49 }
 0x126   : > { %v1061_v13 = vpop.f32.mrf.mxu2 }
 0x127   : > { %v1150_v14 = vpop.f32.mrf.mxu3 }
 0x128   : > { %v3413_v15 = vadd.f32 %v1150_v14, %v1061_v13  ;;  %v2292_v13 = vld [vmem:[%s3291_s9 + $0x138] sm:$0xf0]  ;;  %v1088_v14 = vadd.f32 %v1087_v39, %v998_v38  ;;  %v1008_v28 = vpop.f32.mrf.mxu0  ;;  %v2632_v38 = vld [vmem:[%s3291_s9 + $0x14c] sm:$0xf] }
 0x129   : > { %v2308_v39 = vld [vmem:[%s3291_s9 + $0x158] sm:$0xf0] }
 0x12a   : > { %v2311_v52 = vor.u32 %v2632_v38, %v2308_v39 }
 0x12e   : > { %v1063_v21 = vpop.f32.mrf.mxu2 }
 0x12f   : > { %v1152_v22 = vpop.f32.mrf.mxu3 }
 0x130   : > { %v3419_v23 = vadd.f32 %v1152_v22, %v1063_v21  ;;  %v2291_v21 = vor.u32 %v2630_v10, %v2290_v6  ;;  %v2295_v22 = vor.u32 %v2628_v11, %v2292_v13  ;;  %v1011_v53 = vpop.f32.mrf.mxu0 }
 0x133   : > { %1203 = vmatmul.bf16.gmra.mxu2 %v2243_v24 }
 0x134   : > { %1292 = vmatmul.bf16.gmra.mxu3 %v2247_v25 }
 0x136   : > { %v1066_v29 = vpop.f32.mrf.mxu2 }
 0x137   : > { %v1155_v30 = vpop.f32.mrf.mxu3 }
 0x138   : > { %v3421_v32 = vadd.f32 %v1155_v30, %v1066_v29  ;;  %v1097_v29 = vpop.f32.mrf.mxu1 }
 0x139   : > { %v1098_v6 = vadd.f32 %v1097_v29, %v1008_v28  ;;  %v2642_v28 = vld [vmem:[%s3291_s9 + $0x194] sm:$0xf0]  ;;  %v2640_v29 = vld [vmem:[%s3291_s9 + $0x18c] sm:$0xf] }
 0x13e   : > { %v1068_v40 = vpop.f32.mrf.mxu2 }
 0x13f   : > { %v1157_v41 = vpop.f32.mrf.mxu3 }
 0x140   : > { %v3427_v42 = vadd.f32 %v1157_v41, %v1068_v40  ;;  %v1093_v40 = vadd.f32 %v1092_v1, %v1003_v0  ;;  %v1100_v54 = vpop.f32.mrf.mxu1  ;;  %v1013_v0 = vpop.f32.mrf.mxu0 }
 0x141   : > { %v1101_v26 = vadd.f32 %v1100_v54, %v1011_v53 }
 0x143   : > { %1208 = vmatmul.bf16.gmra.mxu2 %v2259_v43 }
 0x144   : > { %1297 = vmatmul.bf16.gmra.mxu3 %v2263_v45 }
 0x146   : > { %v1071_v46 = vpop.f32.mrf.mxu2 }
 0x147   : > { %v1160_v47 = vpop.f32.mrf.mxu3 }
 0x148   : > { %v3429_v48 = vadd.f32 %v1160_v47, %v1071_v46  ;;  %v2307_v47 = vor.u32 %v2634_v36, %v2306_v35  ;;  %v1102_v1 = vpop.f32.mrf.mxu1 }
 0x14e   : > { %v1073_v56 = vpop.f32.mrf.mxu2 }
 0x14f   : > { %v1162_v59 = vpop.f32.mrf.mxu3 }
 0x150   : > { %v3435_v60 = vadd.f32 %v1162_v59, %v1073_v56 }
 0x153   : > { %1213 = vmatmul.bf16.gmra.mxu2 %v2275_v61 }
 0x154   : > { %1302 = vmatmul.bf16.gmra.mxu3 %v2279_v62  ;;  %v1096_v62 = vadd.f32 %v1095_v9, %v1006_v7  ;;  %v1016_v9 = vpop.f32.mrf.mxu0 }
 0x156   : > { %v1174_v3 = vpop.f32.mrf.mxu2 }
 0x157   : > { %v1263_v4 = vpop.f32.mrf.mxu3  ;;  %v1175_v16 = vadd.f32 %v1174_v3, %v1086_v5  ;;  %v2638_v3 = vld [vmem:[%s3291_s9 + $0x174] sm:$0xf0]  ;;  %v2324_v5 = vld [vmem:[%s3291_s9 + $0x178] sm:$0xf0] }
 0x159   : > { %v1264_v24 = vadd.f32 %v1263_v4, %v1175_v16  ;;  %v2636_v4 = vld [vmem:[%s3291_s9 + $0x16c] sm:$0xf]  ;;  %v2323_v16 = vor.u32 %v2638_v3, %v2322_v2 }
 0x15c   : > { %v1018_v35 = vpop.f32.mrf.mxu0 }
 0x15e   : > { %v1176_v17 = vpop.f32.mrf.mxu2 }
 0x15f   : > { %v1265_v19 = vpop.f32.mrf.mxu3  ;;  %v1177_v20 = vadd.f32 %v1176_v17, %v1088_v14  ;;  %v2327_v17 = vor.u32 %v2636_v4, %v2324_v5 }
 0x161   : > { %v1266_v25 = vadd.f32 %v1265_v19, %v1177_v20 }
 0x163   : > { %v1514_v27 = vpack.c.bf16 %v1266_v25, %v1264_v24  ;;  %1218 = vmatmul.bf16.gmra.mxu2 %v2291_v21  ;;  %v1105_v21 = vpop.f32.mrf.mxu1 }
 0x164   : > { %1307 = vmatmul.bf16.gmra.mxu3 %v2295_v22  ;;  %v2699_v22 = vld [vmem:[#allocation9 + $0x20] sm:$0xff]  ;;  %v1106_v49 = vadd.f32 %v1105_v21, %v1016_v9 }
 0x165   : > { %1606 = vmatmul.bf16.vlgmr.msrb.gmra.mxu0 %v1514_v27  ;;  %1806 = vmatpush.bf16.msrb.mxu1 %v2699_v22  ;;  %v2338_v27 = vld [vmem:[%s3291_s9 + $0x188] sm:$0xf] }
 0x166   : > { %v1179_v30 = vpop.f32.mrf.mxu2  ;;  %v2370_v22 = vld [vmem:[%s3291_s9 + $0x1c8] sm:$0xf] }
 0x167   : > { %v1268_v33 = vpop.f32.mrf.mxu3  ;;  %v1180_v41 = vadd.f32 %v1179_v30, %v1091_v34  ;;  %v2340_v30 = vld [vmem:[%s3291_s9 + $0x198] sm:$0xf0] }
 0x169   : > { %v1269_v55 = vadd.f32 %v1268_v33, %v1180_v41  ;;  %v1103_v33 = vadd.f32 %v1102_v1, %v1013_v0  ;;  %v2339_v41 = vor.u32 %v2642_v28, %v2338_v27 }
 0x16b   : > { %v1107_v36 = vpop.f32.mrf.mxu1 }
 0x16c   : > { %v1108_v0 = vadd.f32 %v1107_v36, %v1018_v35 }
 0x16e   : > { %v1181_v43 = vpop.f32.mrf.mxu2 }
 0x16f   : > { %v1270_v45 = vpop.f32.mrf.mxu3  ;;  %v1182_v46 = vadd.f32 %v1181_v43, %v1093_v40  ;;  %v2343_v43 = vor.u32 %v2640_v29, %v2340_v30 }
 0x171   : > { %v1271_v56 = vadd.f32 %v1270_v45, %v1182_v46 }
 0x173   : > { %1223 = vmatmul.bf16.gmra.mxu2 %v2307_v47  ;;  %v1515_v50 = vpack.c.bf16 %v1271_v56, %v1269_v55  ;;  %v1021_v55 = vpop.f32.mrf.mxu0  ;;  %v1110_v56 = vpop.f32.mrf.mxu1 }
 0x174   : > { %1312 = vmatmul.bf16.gmra.mxu3 %v2311_v52  ;;  %v2698_v52 = vld [vmem:[#allocation9 + $0x18] sm:$0xff] }
 0x175   : > { %1611 = vmatmul.bf16.gmra.mxu0 %v1515_v50  ;;  %1807 = vmatpush.bf16.msrb.mxu1 %v2698_v52  ;;  %v2354_v50 = vld [vmem:[%s3291_s9 + $0x1a8] sm:$0xf] }
 0x176   : > { %v1184_v59 = vpop.f32.mrf.mxu2  ;;  %v2386_v52 = vld [vmem:[%s3291_s9 + $0x1e8] sm:$0xf] }
 0x177   : > { %v1273_v61 = vpop.f32.mrf.mxu3  ;;  %v1185_v10 = vadd.f32 %v1184_v59, %v1096_v62  ;;  %v2646_v59 = vld [vmem:[%s3291_s9 + $0x1b4] sm:$0xf0]  ;;  %v2356_v62 = vld [vmem:[%s3291_s9 + $0x1b8] sm:$0xf0] }
 0x178   : > { %v2355_v5 = vor.u32 %v2646_v59, %v2354_v50 }
 0x179   : > { %v1274_v19 = vadd.f32 %v1273_v61, %v1185_v10  ;;  %v2644_v61 = vld [vmem:[%s3291_s9 + $0x1ac] sm:$0xf] }
 0x17e   : > { %v1186_v11 = vpop.f32.mrf.mxu2 }
 0x17f   : > { %v1275_v13 = vpop.f32.mrf.mxu3  ;;  %v1187_v14 = vadd.f32 %v1186_v11, %v1098_v6  ;;  %v2359_v6 = vor.u32 %v2644_v61, %v2356_v62 }
 0x181   : > { %v1276_v20 = vadd.f32 %v1275_v13, %v1187_v14  ;;  %v1023_v13 = vpop.f32.mrf.mxu0  ;;  %v1112_v14 = vpop.f32.mrf.mxu1 }
 0x182   : > { %v1113_v27 = vadd.f32 %v1112_v14, %v1023_v13 }
 0x183   : > { %1228 = vmatmul.bf16.gmra.mxu2 %v2323_v16  ;;  %v1516_v7 = vpack.c.bf16 %v1276_v20, %v1274_v19 }
 0x184   : > { %1317 = vmatmul.bf16.gmra.mxu3 %v2327_v17  ;;  %v2697_v17 = vld [vmem:[#allocation9 + $0x10] sm:$0xff] }
 0x185   : > { %1616 = vmatmul.bf16.gmra.mxu0 %v1516_v7  ;;  %1808 = vmatpush.bf16.msrb.mxu1 %v2697_v17  ;;  %v1111_v7 = vadd.f32 %v1110_v56, %v1021_v55  ;;  %v2388_v55 = vld [vmem:[%s3291_s9 + $0x1f8] sm:$0xf0] }
 0x186   : > { %v1189_v24 = vpop.f32.mrf.mxu2 }
 0x187   : > { %v1278_v25 = vpop.f32.mrf.mxu3  ;;  %v1190_v34 = vadd.f32 %v1189_v24, %v1101_v26  ;;  %v2650_v24 = vld [vmem:[%s3291_s9 + $0x1d4] sm:$0xf0]  ;;  %v2372_v26 = vld [vmem:[%s3291_s9 + $0x1d8] sm:$0xf0] }
 0x189   : > { %v1279_v45 = vadd.f32 %v1278_v25, %v1190_v34  ;;  %v1026_v9 = vpop.f32.mrf.mxu0  ;;  %v1115_v21 = vpop.f32.mrf.mxu1  ;;  %v2648_v25 = vld [vmem:[%s3291_s9 + $0x1cc] sm:$0xf]  ;;  %v2371_v34 = vor.u32 %v2650_v24, %v2370_v22 }
 0x18a   : > { %v2375_v35 = vor.u32 %v2648_v25, %v2372_v26 }
 0x18e   : > { %v1191_v38 = vpop.f32.mrf.mxu2 }
 0x18f   : > { %v1280_v39 = vpop.f32.mrf.mxu3  ;;  %v1192_v40 = vadd.f32 %v1191_v38, %v1103_v33 }
 0x191   : > { %v1281_v46 = vadd.f32 %v1280_v39, %v1192_v40  ;;  %v2696_v40 = vld [vmem:[#allocation9 + $0x8] sm:$0xff] }
 0x192   : > { %1809 = vmatpush.bf16.msrb.mxu1 %v2696_v40 }
 0x193   : > { %1233 = vmatmul.bf16.gmra.mxu2 %v2339_v41  ;;  %v1517_v47 = vpack.c.bf16 %v1281_v46, %v1279_v45  ;;  %v1028_v41 = vpop.f32.mrf.mxu0 }
 0x194   : > { %1322 = vmatmul.bf16.gmra.mxu3 %v2343_v43  ;;  %v1117_v43 = vpop.f32.mrf.mxu1 }
 0x195   : > { %1621 = vmatmul.bf16.gmra.mxu0 %v1517_v47  ;;  %v1116_v47 = vadd.f32 %v1115_v21, %v1026_v9  ;;  %v1118_v56 = vadd.f32 %v1117_v43, %v1028_v41 }
 0x196   : > { %v1194_v53 = vpop.f32.mrf.mxu2 }
 0x197   : > { %v1283_v54 = vpop.f32.mrf.mxu3  ;;  %v1195_v1 = vadd.f32 %v1194_v53, %v1106_v49  ;;  %v2654_v53 = vld [vmem:[%s3291_s9 + $0x1f4] sm:$0xf0] }
 0x198   : > { %v2387_v62 = vor.u32 %v2654_v53, %v2386_v52 }
 0x199   : > { %v1284_v10 = vadd.f32 %v1283_v54, %v1195_v1  ;;  %v2652_v54 = vld [vmem:[%s3291_s9 + $0x1ec] sm:$0xf]  ;;  %s3056_s9 = scalar_lea.hbm %s3619_s6, 256 }
 0x19a   : > { %p3058_p12 = scmp.lt.s32.totalorder %s3056_s9, %s3052_s30 }
 0x19b   : > { %v1031_v1 = vpop.f32.mrf.mxu0 }
 0x19c   : > { %p3059_p13 = por %p3058_p12, %p3057_p10 }
 0x19e   : > { %v1196_v2 = vpop.f32.mrf.mxu2  ;;  %p3060_p0 = pnand %p3059_p13, %p3055_p8 }
 0x19f   : > { %v1285_v3 = vpop.f32.mrf.mxu3  ;;  %v1197_v4 = vadd.f32 %v1196_v2, %v1108_v0  ;;  %v2391_v0 = vor.u32 %v2652_v54, %v2388_v55  ;;  %v1120_v2 = vpop.f32.mrf.mxu1 }
 0x1a0   : > { %v1121_v13 = vadd.f32 %v1120_v2, %v1031_v1 }
 0x1a1   : > { %v1286_v11 = vadd.f32 %v1285_v3, %v1197_v4 }
 0x1a3   : > { %v1518_v16 = vpack.c.bf16 %v1286_v11, %v1284_v10  ;;  %1238 = vmatmul.bf16.gmra.mxu2 %v2355_v5  ;;  %v1033_v14 = vpop.f32.mrf.mxu0 }
 0x1a4   : > { %1327 = vmatmul.bf16.gmra.mxu3 %v2359_v6  ;;  %v2695_v6 = vld [vmem:[#allocation9] sm:$0xff] }
 0x1a5   : > { %1626 = vmatmul.bf16.gmra.mxu0 %v1518_v16  ;;  %1810 = vmatpush.bf16.msrb.mxu1 %v2695_v6 }
 0x1a6   : > { %v1199_v19 = vpop.f32.mrf.mxu2 }
 0x1a7   : > { %v1288_v20 = vpop.f32.mrf.mxu3  ;;  %v1200_v28 = vadd.f32 %v1199_v19, %v1111_v7  ;;  %v1122_v16 = vpop.f32.mrf.mxu1 }
 0x1a8   : > { %v1123_v17 = vadd.f32 %v1122_v16, %v1033_v14 }
 0x1a9   : > { %v1289_v36 = vadd.f32 %v1288_v20, %v1200_v28 }
 0x1ae   : > { %v1201_v29 = vpop.f32.mrf.mxu2 }
 0x1af   : > { %v1290_v30 = vpop.f32.mrf.mxu3  ;;  %v1202_v33 = vadd.f32 %v1201_v29, %v1113_v27 }
 0x1b1   : > { %v1291_v38 = vadd.f32 %v1290_v30, %v1202_v33 }
 0x1b3   : > { %v1519_v39 = vpack.c.bf16 %v1291_v38, %v1289_v36  ;;  %1243 = vmatmul.bf16.gmra.mxu2 %v2371_v34  ;;  %v3470_v38 = vld [vmem:[%s3616_s3] ss:$0 sm:$0xff] }
 0x1b4   : > { %1332 = vmatmul.bf16.gmra.mxu3 %v2375_v35 }
 0x1b5   : > { %1631 = vmatmul.bf16.gmra.mxu0 %v1519_v39 }
 0x1b6   : > { %v1204_v45 = vpop.f32.mrf.mxu2 }
 0x1b7   : > { %v1293_v46 = vpop.f32.mrf.mxu3  ;;  %v1205_v49 = vadd.f32 %v1204_v45, %v1116_v47 }
 0x1b9   : > { %v1294_v3 = vadd.f32 %v1293_v46, %v1205_v49 }
 0x1be   : > { %v1206_v50 = vpop.f32.mrf.mxu2 }
 0x1bf   : > { %v1295_v59 = vpop.f32.mrf.mxu3  ;;  %v1207_v61 = vadd.f32 %v1206_v50, %v1118_v56 }
 0x1c1   : > { %v1296_v4 = vadd.f32 %v1295_v59, %v1207_v61 }
 0x1c3   : > { %v1520_v5 = vpack.c.bf16 %v1296_v4, %v1294_v3  ;;  %1248 = vmatmul.bf16.gmra.mxu2 %v2387_v62 }
 0x1c4   : > { %1337 = vmatmul.bf16.gmra.mxu3 %v2391_v0 }
 0x1c5   : > { %1636 = vmatmul.bf16.gmra.mxu0 %v1520_v5 }
 0x1c6   : > { %v1209_v10 = vpop.f32.mrf.mxu2 }
 0x1c7   : > { %v1298_v11 = vpop.f32.mrf.mxu3  ;;  %v1210_v19 = vadd.f32 %v1209_v10, %v1121_v13 }
 0x1c9   : > { %v1299_v21 = vadd.f32 %v1298_v11, %v1210_v19 }
 0x1ce   : > { %v1211_v20 = vpop.f32.mrf.mxu2 }
 0x1cf   : > { %v1300_v7 = vpop.f32.mrf.mxu3  ;;  %v1212_v9 = vadd.f32 %v1211_v20, %v1123_v17 }
 0x1d1   : > { %v1301_v22 = vadd.f32 %v1300_v7, %v1212_v9 }
 0x1d3   : > { %v1521_v24 = vpack.c.bf16 %v1301_v22, %v1299_v21 }
 0x1d5   : > { %1641 = vmatmul.bf16.gmra.mxu0 %v1521_v24 }
 0x1d6   : > { %v1214_v25 = vpop.f32.mrf.mxu2 }
 0x1d7   : > { %v1303_v26 = vpop.f32.mrf.mxu3  ;;  %v1215_v27 = vadd.f32 %v1214_v25, %v3353_v44 }
 0x1d9   : > { %v1304_v33 = vadd.f32 %v1303_v26, %v1215_v27 }
 0x1de   : > { %v1216_v28 = vpop.f32.mrf.mxu2 }
 0x1df   : > { %v1305_v29 = vpop.f32.mrf.mxu3  ;;  %v1217_v30 = vadd.f32 %v1216_v28, %v3363_v57 }
 0x1e1   : > { %v1306_v34 = vadd.f32 %v1305_v29, %v1217_v30 }
 0x1e2   : > { %v1607_v35 = vpop.f32.mrf.mxu0 }
 0x1e3   : > { %v1522_v36 = vpack.c.bf16 %v1306_v34, %v1304_v33  ;;  %v1608_v41 = vadd.f32 %v3470_v38, %v1607_v35 }
 0x1e5   : > { %1646 = vmatmul.bf16.gmra.mxu0 %v1522_v36  ;;  %v1687_v45 = vmax.f32 %v1608_v41, 0.0 }
 0x1e6   : > { %v1219_v39 = vpop.f32.mrf.mxu2 }
 0x1e7   : > { %v1308_v40 = vpop.f32.mrf.mxu3  ;;  %v1220_v57 = vadd.f32 %v1219_v39, %v3365_v63 }
 0x1e9   : > { %v1309_v55 = vadd.f32 %v1308_v40, %v1220_v57 }
 0x1ea   : > { %v1609_v43 = vpop.f32.mrf.mxu0 }
 0x1eb   : > { %v1610_v44 = vadd.f32 %v3470_v38, %v1609_v43 }
 0x1ed   : > { %v1688_v46 = vmax.f32 %v1610_v44, 0.0 }
 0x1ee   : > { %v1221_v47 = vpop.f32.mrf.mxu2 }
 0x1ef   : > { %v1310_v52 = vpop.f32.mrf.mxu3  ;;  %v1222_v53 = vadd.f32 %v1221_v47, %v3375_v12  ;;  %v1719_v54 = vpack.c.bf16 %v1688_v46, %v1687_v45 }
 0x1f1   : > { %v1311_v56 = vadd.f32 %v1310_v52, %v1222_v53  ;;  %1811 = vmatmul.bf16.vlgmr.msrb.gmra.mxu1 %v1719_v54 }
 0x1f2   : > { %v1612_v49 = vpop.f32.mrf.mxu0 }
 0x1f3   : > { %v1523_v50 = vpack.c.bf16 %v1311_v56, %v1309_v55  ;;  %v1613_v62 = vadd.f32 %v3470_v38, %v1612_v49 }
 0x1f5   : > { %1651 = vmatmul.bf16.gmra.mxu0 %v1523_v50  ;;  %v1689_v63 = vmax.f32 %v1613_v62, 0.0 }
 0x1f6   : > { %v1224_v59 = vpop.f32.mrf.mxu2 }
 0x1f7   : > { %v1313_v61 = vpop.f32.mrf.mxu3  ;;  %v1225_v2 = vadd.f32 %v1224_v59, %v3377_v18 }
 0x1f9   : > { %v1314_v10 = vadd.f32 %v1313_v61, %v1225_v2 }
 0x1fa   : > { %v1614_v0 = vpop.f32.mrf.mxu0 }
 0x1fb   : > { %v1615_v1 = vadd.f32 %v3470_v38, %v1614_v0 }
 0x1fd   : > { %v1690_v3 = vmax.f32 %v1615_v1, 0.0 }
 0x1fe   : > { %v1226_v4 = vpop.f32.mrf.mxu2 }
 0x1ff   : > { %v1315_v12 = vpop.f32.mrf.mxu3  ;;  %v1227_v5 = vadd.f32 %v1226_v4, %v3387_v31  ;;  %v1720_v6 = vpack.c.bf16 %v1690_v3, %v1689_v63 }
 0x201   : > { %v1316_v11 = vadd.f32 %v1315_v12, %v1227_v5  ;;  %1816 = vmatmul.bf16.gmra.mxu1 %v1720_v6 }
 0x202   : > { %v1617_v13 = vpop.f32.mrf.mxu0 }
 0x203   : > { %v1524_v14 = vpack.c.bf16 %v1316_v11, %v1314_v10  ;;  %v1618_v19 = vadd.f32 %v3470_v38, %v1617_v13 }
 0x205   : > { %1656 = vmatmul.bf16.gmra.mxu0 %v1524_v14  ;;  %v1691_v18 = vmax.f32 %v1618_v19, 0.0 }
 0x206   : > { %v1229_v16 = vpop.f32.mrf.mxu2 }
 0x207   : > { %v1318_v17 = vpop.f32.mrf.mxu3  ;;  %v1230_v9 = vadd.f32 %v1229_v16, %v3389_v37 }
 0x209   : > { %v1319_v26 = vadd.f32 %v1318_v17, %v1230_v9 }
 0x20a   : > { %v1619_v20 = vpop.f32.mrf.mxu0 }
 0x20b   : > { %v1620_v7 = vadd.f32 %v3470_v38, %v1619_v20 }
 0x20d   : > { %v1692_v21 = vmax.f32 %v1620_v7, 0.0 }
 0x20e   : > { %v1231_v22 = vpop.f32.mrf.mxu2 }
 0x20f   : > { %v1320_v31 = vpop.f32.mrf.mxu3  ;;  %v1232_v24 = vadd.f32 %v1231_v22, %v3399_v51  ;;  %v1721_v25 = vpack.c.bf16 %v1692_v21, %v1691_v18 }
 0x211   : > { %v1321_v27 = vadd.f32 %v1320_v31, %v1232_v24  ;;  %1821 = vmatmul.bf16.gmra.mxu1 %v1721_v25 }
 0x212   : > { %v1622_v28 = vpop.f32.mrf.mxu0 }
 0x213   : > { %v1525_v29 = vpack.c.bf16 %v1321_v27, %v1319_v26  ;;  %v1623_v34 = vadd.f32 %v3470_v38, %v1622_v28 }
 0x215   : > { %1661 = vmatmul.bf16.gmra.mxu0 %v1525_v29  ;;  %v1693_v37 = vmax.f32 %v1623_v34, 0.0 }
 0x216   : > { %v1234_v30 = vpop.f32.mrf.mxu2 }
 0x217   : > { %v1323_v33 = vpop.f32.mrf.mxu3  ;;  %v1235_v39 = vadd.f32 %v1234_v30, %v3401_v58 }
 0x219   : > { %v1324_v45 = vadd.f32 %v1323_v33, %v1235_v39 }
 0x21a   : > { %v1624_v35 = vpop.f32.mrf.mxu0 }
 0x21b   : > { %v1625_v36 = vadd.f32 %v3470_v38, %v1624_v35 }
 0x21d   : > { %v1694_v40 = vmax.f32 %v1625_v36, 0.0 }
 0x21e   : > { %v1236_v41 = vpop.f32.mrf.mxu2 }
 0x21f   : > { %v1325_v51 = vpop.f32.mrf.mxu3  ;;  %v1237_v43 = vadd.f32 %v1236_v41, %v3411_v8  ;;  %v1722_v44 = vpack.c.bf16 %v1694_v40, %v1693_v37 }
 0x221   : > { %v1326_v57 = vadd.f32 %v1325_v51, %v1237_v43  ;;  %1826 = vmatmul.bf16.gmra.mxu1 %v1722_v44 }
 0x222   : > { %v1627_v46 = vpop.f32.mrf.mxu0 }
 0x223   : > { %v1526_v47 = vpack.c.bf16 %v1326_v57, %v1324_v45  ;;  %v1628_v54 = vadd.f32 %v3470_v38, %v1627_v46 }
 0x225   : > { %1666 = vmatmul.bf16.gmra.mxu0 %v1526_v47  ;;  %v1695_v58 = vmax.f32 %v1628_v54, 0.0  ;;  %v3507_v47 = vld [vmem:[%s3618_s5] ss:$0 sm:$0xff] }
 0x226   : > { %v1239_v52 = vpop.f32.mrf.mxu2 }
 0x227   : > { %v1328_v53 = vpop.f32.mrf.mxu3  ;;  %v1240_v49 = vadd.f32 %v1239_v52, %v3413_v15 }
 0x229   : > { %v1329_v0 = vadd.f32 %v1328_v53, %v1240_v49 }
 0x22a   : > { %v1629_v55 = vpop.f32.mrf.mxu0 }
 0x22b   : > { %v1630_v56 = vadd.f32 %v3470_v38, %v1629_v55 }
 0x22d   : > { %v1696_v50 = vmax.f32 %v1630_v56, 0.0 }
 0x22e   : > { %v1241_v59 = vpop.f32.mrf.mxu2 }
 0x22f   : > { %v1330_v8 = vpop.f32.mrf.mxu3  ;;  %v1723_v61 = vpack.c.bf16 %v1696_v50, %v1695_v58  ;;  %v1242_v62 = vadd.f32 %v1241_v59, %v3419_v23 }
 0x231   : > { %v1331_v1 = vadd.f32 %v1330_v8, %v1242_v62  ;;  %1831 = vmatmul.bf16.gmra.mxu1 %v1723_v61 }
 0x232   : > { %v1632_v63 = vpop.f32.mrf.mxu0 }
 0x233   : > { %v1527_v2 = vpack.c.bf16 %v1331_v1, %v1329_v0  ;;  %v1633_v12 = vadd.f32 %v3470_v38, %v1632_v63 }
 0x235   : > { %1671 = vmatmul.bf16.gmra.mxu0 %v1527_v2  ;;  %v1697_v15 = vmax.f32 %v1633_v12, 0.0 }
 0x236   : > { %v1244_v3 = vpop.f32.mrf.mxu2 }
 0x237   : > { %v1333_v4 = vpop.f32.mrf.mxu3  ;;  %v1245_v10 = vadd.f32 %v1244_v3, %v3421_v32 }
 0x239   : > { %v1334_v17 = vadd.f32 %v1333_v4, %v1245_v10 }
 0x23a   : > { %v1634_v5 = vpop.f32.mrf.mxu0 }
 0x23b   : > { %v1635_v6 = vadd.f32 %v3470_v38, %v1634_v5 }
 0x23d   : > { %v1698_v11 = vmax.f32 %v1635_v6, 0.0 }
 0x23e   : > { %v1246_v13 = vpop.f32.mrf.mxu2 }
 0x23f   : > { %v1335_v14 = vpop.f32.mrf.mxu3  ;;  %v1724_v23 = vpack.c.bf16 %v1698_v11, %v1697_v15  ;;  %v1247_v16 = vadd.f32 %v1246_v13, %v3427_v42 }
 0x241   : > { %v1336_v19 = vadd.f32 %v1335_v14, %v1247_v16  ;;  %1836 = vmatmul.bf16.gmra.mxu1 %v1724_v23 }
 0x242   : > { %v1637_v20 = vpop.f32.mrf.mxu0 }
 0x243   : > { %v1528_v7 = vpack.c.bf16 %v1336_v19, %v1334_v17  ;;  %v1638_v21 = vadd.f32 %v3470_v38, %v1637_v20 }
 0x245   : > { %1676 = vmatmul.bf16.gmra.mxu0 %v1528_v7  ;;  %v1699_v32 = vmax.f32 %v1638_v21, 0.0 }
 0x246   : > { %v1249_v18 = vpop.f32.mrf.mxu2 }
 0x247   : > { %v1338_v9 = vpop.f32.mrf.mxu3  ;;  %v1250_v24 = vadd.f32 %v1249_v18, %v3429_v48 }
 0x249   : > { %v1339_v29 = vadd.f32 %v1338_v9, %v1250_v24 }
 0x24a   : > { %v1639_v22 = vpop.f32.mrf.mxu0 }
 0x24b   : > { %v1640_v31 = vadd.f32 %v3470_v38, %v1639_v22 }
 0x24d   : > { %v1700_v25 = vmax.f32 %v1640_v31, 0.0 }
 0x24e   : > { %v1251_v26 = vpop.f32.mrf.mxu2 }
 0x24f   : > { %v1725_v27 = vpack.c.bf16 %v1700_v25, %v1699_v32  ;;  %v1252_v42 = vadd.f32 %v1251_v26, %v3435_v60  ;;  %v1340_v28 = vpop.f32.mrf.mxu3 }
 0x251   : > { %v1341_v30 = vadd.f32 %v1340_v28, %v1252_v42  ;;  %1841 = vmatmul.bf16.gmra.mxu1 %v1725_v27 }
 0x252   : > { %v1642_v33 = vpop.f32.mrf.mxu0 }
 0x253   : > { %v1529_v34 = vpack.c.bf16 %v1341_v30, %v1339_v29  ;;  %v1643_v35 = vadd.f32 %v3470_v38, %v1642_v33 }
 0x255   : > { %1681 = vmatmul.bf16.gmra.mxu0 %v1529_v34  ;;  %v1701_v39 = vmax.f32 %v1643_v35, 0.0 }
 0x25a   : > { %v1644_v36 = vpop.f32.mrf.mxu0 }
 0x25b   : > { %v1645_v37 = vadd.f32 %v3470_v38, %v1644_v36 }
 0x25d   : > { %v1702_v40 = vmax.f32 %v1645_v37, 0.0 }
 0x25f   : > { %v1726_v48 = vpack.c.bf16 %v1702_v40, %v1701_v39 }
 0x261   : > { %1846 = vmatmul.bf16.gmra.mxu1 %v1726_v48 }
 0x262   : > { %v1647_v41 = vpop.f32.mrf.mxu0 }
 0x263   : > { %v1648_v60 = vadd.f32 %v3470_v38, %v1647_v41 }
 0x265   : > { %v1703_v44 = vmax.f32 %v1648_v60, 0.0 }
 0x26a   : > { %v1649_v51 = vpop.f32.mrf.mxu0 }
 0x26b   : > { %v1650_v43 = vadd.f32 %v3470_v38, %v1649_v51 }
 0x26d   : > { %v1704_v45 = vmax.f32 %v1650_v43, 0.0 }
 0x26e   : > { %v1812_v57 = vpop.f32.mrf.mxu1 }
 0x26f   : > { %v1727_v46 = vpack.c.bf16 %v1704_v45, %v1703_v44  ;;  %v1813_v53 = vadd.f32 %v3507_v47, %v1812_v57 }
 0x271   : > { %1851 = vmatmul.bf16.gmra.mxu1 %v1727_v46  ;;  %v1892_v56 = vmax.f32 %v1813_v53, 0.0 }
 0x272   : > { %v1652_v52 = vpop.f32.mrf.mxu0 }
 0x273   : > { %v1653_v58 = vadd.f32 %v3470_v38, %v1652_v52 }
 0x275   : > { %v1705_v61 = vmax.f32 %v1653_v58, 0.0 }
 0x276   : > { %v1814_v54 = vpop.f32.mrf.mxu1 }
 0x277   : > { %v1815_v55 = vadd.f32 %v3507_v47, %v1814_v54 }
 0x279   : > { %v1893_v49 = vmax.f32 %v1815_v55, 0.0 }
 0x27a   : > { %v1654_v50 = vpop.f32.mrf.mxu0 }
 0x27b   : > { %v2707_v59 = vpack.c.bf16 %v1893_v49, %v1892_v56  ;;  %v1655_v8 = vadd.f32 %v3470_v38, %v1654_v50 }
 0x27d   : > { %2708 = vst [vmem:[%s3514_s12] sm:$0xff] %v2707_v59   ;;  %v1706_v62 = vmax.f32 %v1655_v8, 0.0 }
 0x27e   : > { %v1817_v0 = vpop.f32.mrf.mxu1 }
 0x27f   : > { %v1728_v1 = vpack.c.bf16 %v1706_v62, %v1705_v61  ;;  %v1818_v2 = vadd.f32 %v3507_v47, %v1817_v0 }
 0x281   : > { %1856 = vmatmul.bf16.gmra.mxu1 %v1728_v1  ;;  %v1894_v12 = vmax.f32 %v1818_v2, 0.0 }
 0x282   : > { %v1657_v63 = vpop.f32.mrf.mxu0 }
 0x283   : > { %v1658_v5 = vadd.f32 %v3470_v38, %v1657_v63 }
 0x285   : > { %v1707_v13 = vmax.f32 %v1658_v5, 0.0 }
 0x286   : > { %v1819_v3 = vpop.f32.mrf.mxu1 }
 0x287   : > { %v1820_v4 = vadd.f32 %v3507_v47, %v1819_v3 }
 0x289   : > { %v1895_v6 = vmax.f32 %v1820_v4, 0.0 }
 0x28a   : > { %v1659_v15 = vpop.f32.mrf.mxu0 }
 0x28b   : > { %v2712_v10 = vpack.c.bf16 %v1895_v6, %v1894_v12  ;;  %v1660_v11 = vadd.f32 %v3470_v38, %v1659_v15 }
 0x28d   : > { %2784 = vst [vmem:[%s3514_s12 + $0x8] sm:$0xff] %v2712_v10   ;;  %v1708_v14 = vmax.f32 %v1660_v11, 0.0 }
 0x28e   : > { %v1822_v23 = vpop.f32.mrf.mxu1 }
 0x28f   : > { %v1729_v16 = vpack.c.bf16 %v1708_v14, %v1707_v13  ;;  %v1823_v19 = vadd.f32 %v3507_v47, %v1822_v23 }
 0x291   : > { %1861 = vmatmul.bf16.gmra.mxu1 %v1729_v16  ;;  %v1896_v18 = vmax.f32 %v1823_v19, 0.0 }
 0x292   : > { %v1662_v17 = vpop.f32.mrf.mxu0 }
 0x293   : > { %v1663_v9 = vadd.f32 %v3470_v38, %v1662_v17 }
 0x295   : > { %v1709_v24 = vmax.f32 %v1663_v9, 0.0 }
 0x296   : > { %v1824_v20 = vpop.f32.mrf.mxu1 }
 0x297   : > { %v1825_v7 = vadd.f32 %v3507_v47, %v1824_v20 }
 0x299   : > { %v1897_v21 = vmax.f32 %v1825_v7, 0.0 }
 0x29a   : > { %v1664_v22 = vpop.f32.mrf.mxu0 }
 0x29b   : > { %v2717_v31 = vpack.c.bf16 %v1897_v21, %v1896_v18  ;;  %v1665_v32 = vadd.f32 %v3470_v38, %v1664_v22 }
 0x29d   : > { %2785 = vst [vmem:[%s3514_s12 + $0x10] sm:$0xff] %v2717_v31   ;;  %v1710_v25 = vmax.f32 %v1665_v32, 0.0 }
 0x29e   : > { %v1827_v26 = vpop.f32.mrf.mxu1 }
 0x29f   : > { %v1730_v27 = vpack.c.bf16 %v1710_v25, %v1709_v24  ;;  %v1828_v28 = vadd.f32 %v3507_v47, %v1827_v26 }
 0x2a1   : > { %1866 = vmatmul.bf16.gmra.mxu1 %v1730_v27  ;;  %v1898_v33 = vmax.f32 %v1828_v28, 0.0 }
 0x2a2   : > { %v1667_v42 = vpop.f32.mrf.mxu0 }
 0x2a3   : > { %v1668_v34 = vadd.f32 %v3470_v38, %v1667_v42 }
 0x2a5   : > { %v1711_v40 = vmax.f32 %v1668_v34, 0.0 }
 0x2a6   : > { %v1829_v29 = vpop.f32.mrf.mxu1 }
 0x2a7   : > { %v1830_v30 = vadd.f32 %v3507_v47, %v1829_v29 }
 0x2a9   : > { %v1899_v35 = vmax.f32 %v1830_v30, 0.0 }
 0x2aa   : > { %v1669_v36 = vpop.f32.mrf.mxu0 }
 0x2ab   : > { %v2722_v37 = vpack.c.bf16 %v1899_v35, %v1898_v33  ;;  %v1670_v39 = vadd.f32 %v3470_v38, %v1669_v36 }
 0x2ad   : > { %2786 = vst [vmem:[%s3514_s12 + $0x18] sm:$0xff] %v2722_v37   ;;  %v1712_v48 = vmax.f32 %v1670_v39, 0.0 }
 0x2ae   : > { %v1832_v41 = vpop.f32.mrf.mxu1 }
 0x2af   : > { %v1731_v60 = vpack.c.bf16 %v1712_v48, %v1711_v40  ;;  %v1833_v43 = vadd.f32 %v3507_v47, %v1832_v41 }
 0x2b1   : > { %1871 = vmatmul.bf16.gmra.mxu1 %v1731_v60  ;;  %v1900_v57 = vmax.f32 %v1833_v43, 0.0 }
 0x2b2   : > { %v1672_v51 = vpop.f32.mrf.mxu0 }
 0x2b3   : > { %v1673_v46 = vadd.f32 %v3470_v38, %v1672_v51 }
 0x2b5   : > { %v1713_v56 = vmax.f32 %v1673_v46, 0.0 }
 0x2b6   : > { %v1834_v44 = vpop.f32.mrf.mxu1 }
 0x2b7   : > { %v1835_v45 = vadd.f32 %v3507_v47, %v1834_v44 }
 0x2b9   : > { %v1901_v52 = vmax.f32 %v1835_v45, 0.0 }
 0x2ba   : > { %v1674_v53 = vpop.f32.mrf.mxu0 }
 0x2bb   : > { %v2727_v54 = vpack.c.bf16 %v1901_v52, %v1900_v57  ;;  %v1675_v55 = vadd.f32 %v3470_v38, %v1674_v53 }
 0x2bd   : > { %2787 = vst [vmem:[%s3514_s12 + $0x20] sm:$0xff] %v2727_v54   ;;  %v1714_v58 = vmax.f32 %v1675_v55, 0.0 }
 0x2be   : > { %v1837_v49 = vpop.f32.mrf.mxu1 }
 0x2bf   : > { %v1732_v50 = vpack.c.bf16 %v1714_v58, %v1713_v56  ;;  %v1838_v8 = vadd.f32 %v3507_v47, %v1837_v49 }
 0x2c1   : > { %1876 = vmatmul.bf16.gmra.mxu1 %v1732_v50  ;;  %v1902_v0 = vmax.f32 %v1838_v8, 0.0 }
 0x2c2   : > { %v1677_v59 = vpop.f32.mrf.mxu0 }
 0x2c3   : > { %v1678_v1 = vadd.f32 %v3470_v38, %v1677_v59 }
 0x2c5   : > { %v1715_v12 = vmax.f32 %v1678_v1, 0.0 }
 0x2c6   : > { %v1839_v61 = vpop.f32.mrf.mxu1 }
 0x2c7   : > { %v1840_v62 = vadd.f32 %v3507_v47, %v1839_v61 }
 0x2c9   : > { %v1903_v63 = vmax.f32 %v1840_v62, 0.0 }
 0x2ca   : > { %v1679_v2 = vpop.f32.mrf.mxu0 }
 0x2cb   : > { %v2732_v3 = vpack.c.bf16 %v1903_v63, %v1902_v0  ;;  %v1680_v4 = vadd.f32 %v3470_v38, %v1679_v2 }
 0x2cd   : > { %2788 = vst [vmem:[%s3514_s12 + $0x28] sm:$0xff] %v2732_v3   ;;  %v1716_v5 = vmax.f32 %v1680_v4, 0.0 }
 0x2ce   : > { %v1842_v6 = vpop.f32.mrf.mxu1 }
 0x2cf   : > { %v1733_v15 = vpack.c.bf16 %v1716_v5, %v1715_v12  ;;  %v1843_v11 = vadd.f32 %v3507_v47, %v1842_v6 }
 0x2d1   : > { %1881 = vmatmul.bf16.gmra.mxu1 %v1733_v15  ;;  %v1904_v23 = vmax.f32 %v1843_v11, 0.0 }
 0x2d2   : > { %v1682_v10 = vpop.f32.mrf.mxu0 }
 0x2d3   : > { %v1683_v16 = vadd.f32 %v3470_v38, %v1682_v10 }
 0x2d5   : > { %v1717_v18 = vmax.f32 %v1683_v16, 0.0 }
 0x2d6   : > { %v1844_v13 = vpop.f32.mrf.mxu1 }
 0x2d7   : > { %v1845_v14 = vadd.f32 %v3507_v47, %v1844_v13 }
 0x2d9   : > { %v1905_v17 = vmax.f32 %v1845_v14, 0.0 }
 0x2da   : > { %v1684_v19 = vpop.f32.mrf.mxu0 }
 0x2db   : > { %v2737_v20 = vpack.c.bf16 %v1905_v17, %v1904_v23  ;;  %v1685_v7 = vadd.f32 %v3470_v38, %v1684_v19 }
 0x2dd   : > { %2789 = vst [vmem:[%s3514_s12 + $0x30] sm:$0xff] %v2737_v20   ;;  %v1718_v9 = vmax.f32 %v1685_v7, 0.0 }
 0x2de   : > { %v1847_v21 = vpop.f32.mrf.mxu1 }
 0x2df   : > { %v1734_v22 = vpack.c.bf16 %v1718_v9, %v1717_v18  ;;  %v1848_v31 = vadd.f32 %v3507_v47, %v1847_v21 }
 0x2e1   : > { %1886 = vmatmul.bf16.gmra.mxu1 %v1734_v22  ;;  %v1906_v25 = vmax.f32 %v1848_v31, 0.0 }
 0x2e6   : > { %v1849_v32 = vpop.f32.mrf.mxu1 }
 0x2e7   : > { %v1850_v24 = vadd.f32 %v3507_v47, %v1849_v32 }
 0x2e9   : > { %v1907_v26 = vmax.f32 %v1850_v24, 0.0 }
 0x2eb   : > { %v2742_v27 = vpack.c.bf16 %v1907_v26, %v1906_v25 }
 0x2ed   : > { %2790 = vst [vmem:[%s3514_s12 + $0x38] sm:$0xff] %v2742_v27  }
 0x2ee   : > { %v1852_v42 = vpop.f32.mrf.mxu1 }
 0x2ef   : > { %v1853_v38 = vadd.f32 %v3507_v47, %v1852_v42 }
 0x2f1   : > { %v1908_v30 = vmax.f32 %v1853_v38, 0.0 }
 0x2f6   : > { %v1854_v28 = vpop.f32.mrf.mxu1 }
 0x2f7   : > { %v1855_v29 = vadd.f32 %v3507_v47, %v1854_v28 }
 0x2f9   : > { %v1909_v33 = vmax.f32 %v1855_v29, 0.0 }
 0x2fb   : > { %v2747_v34 = vpack.c.bf16 %v1909_v33, %v1908_v30 }
 0x2fd   : > { %2791 = vst [vmem:[%s3514_s12 + $0x40] sm:$0xff] %v2747_v34  }
 0x2fe   : > { %v1857_v35 = vpop.f32.mrf.mxu1 }
 0x2ff   : > { %v1858_v36 = vadd.f32 %v3507_v47, %v1857_v35 }
 0x301   : > { %v1910_v40 = vmax.f32 %v1858_v36, 0.0 }
 0x306   : > { %v1859_v37 = vpop.f32.mrf.mxu1 }
 0x307   : > { %v1860_v39 = vadd.f32 %v3507_v47, %v1859_v37 }
 0x309   : > { %v1911_v48 = vmax.f32 %v1860_v39, 0.0 }
 0x30b   : > { %v2752_v41 = vpack.c.bf16 %v1911_v48, %v1910_v40 }
 0x30d   : > { %2792 = vst [vmem:[%s3514_s12 + $0x48] sm:$0xff] %v2752_v41  }
 0x30e   : > { %v1862_v60 = vpop.f32.mrf.mxu1 }
 0x30f   : > { %v1863_v51 = vadd.f32 %v3507_v47, %v1862_v60 }
 0x311   : > { %v1912_v45 = vmax.f32 %v1863_v51, 0.0 }
 0x316   : > { %v1864_v43 = vpop.f32.mrf.mxu1 }
 0x317   : > { %v1865_v44 = vadd.f32 %v3507_v47, %v1864_v43 }
 0x319   : > { %v1913_v57 = vmax.f32 %v1865_v44, 0.0 }
 0x31b   : > { %v2757_v46 = vpack.c.bf16 %v1913_v57, %v1912_v45 }
 0x31d   : > { %2793 = vst [vmem:[%s3514_s12 + $0x50] sm:$0xff] %v2757_v46  }
 0x31e   : > { %v1867_v52 = vpop.f32.mrf.mxu1 }
 0x31f   : > { %v1868_v53 = vadd.f32 %v3507_v47, %v1867_v52 }
 0x321   : > { %v1914_v56 = vmax.f32 %v1868_v53, 0.0 }
 0x326   : > { %v1869_v54 = vpop.f32.mrf.mxu1 }
 0x327   : > { %v1870_v55 = vadd.f32 %v3507_v47, %v1869_v54 }
 0x329   : > { %v1915_v58 = vmax.f32 %v1870_v55, 0.0 }
 0x32b   : > { %v2762_v49 = vpack.c.bf16 %v1915_v58, %v1914_v56 }
 0x32d   : > { %2794 = vst [vmem:[%s3514_s12 + $0x58] sm:$0xff] %v2762_v49  }
 0x32e   : > { %v1872_v50 = vpop.f32.mrf.mxu1 }
 0x32f   : > { %v1873_v59 = vadd.f32 %v3507_v47, %v1872_v50 }
 0x331   : > { %v1916_v62 = vmax.f32 %v1873_v59, 0.0 }
 0x336   : > { %v1874_v8 = vpop.f32.mrf.mxu1 }
 0x337   : > { %v1875_v61 = vadd.f32 %v3507_v47, %v1874_v8 }
 0x339   : > { %v1917_v0 = vmax.f32 %v1875_v61, 0.0 }
 0x33b   : > { %v2767_v1 = vpack.c.bf16 %v1917_v0, %v1916_v62 }
 0x33d   : > { %2795 = vst [vmem:[%s3514_s12 + $0x60] sm:$0xff] %v2767_v1  }
 0x33e   : > { %v1877_v63 = vpop.f32.mrf.mxu1 }
 0x33f   : > { %v1878_v2 = vadd.f32 %v3507_v47, %v1877_v63 }
 0x341   : > { %v1918_v12 = vmax.f32 %v1878_v2, 0.0 }
 0x346   : > { %v1879_v3 = vpop.f32.mrf.mxu1 }
 0x347   : > { %v1880_v4 = vadd.f32 %v3507_v47, %v1879_v3 }
 0x349   : > { %v1919_v5 = vmax.f32 %v1880_v4, 0.0 }
 0x34b   : > { %v2772_v6 = vpack.c.bf16 %v1919_v5, %v1918_v12 }
 0x34d   : > { %2796 = vst [vmem:[%s3514_s12 + $0x68] sm:$0xff] %v2772_v6  }
 0x34e   : > { %v1882_v15 = vpop.f32.mrf.mxu1 }
 0x34f   : > { %v1883_v10 = vadd.f32 %v3507_v47, %v1882_v15 }
 0x351   : > { %v1920_v14 = vmax.f32 %v1883_v10, 0.0 }
 0x356   : > { %v1884_v11 = vpop.f32.mrf.mxu1 }
 0x357   : > { %v1885_v13 = vadd.f32 %v3507_v47, %v1884_v11 }
 0x359   : > { %v1921_v23 = vmax.f32 %v1885_v13, 0.0 }
 0x35b   : > { %v2777_v16 = vpack.c.bf16 %v1921_v23, %v1920_v14 }
 0x35d   : > { %2797 = vst [vmem:[%s3514_s12 + $0x70] sm:$0xff] %v2777_v16  }
 0x35e   : > { %v1887_v17 = vpop.f32.mrf.mxu1 }
 0x35f   : > { %v1888_v19 = vadd.f32 %v3507_v47, %v1887_v17 }
 0x361   : > { %v1922_v18 = vmax.f32 %v1888_v19, 0.0 }
 0x366   : > { %v1889_v20 = vpop.f32.mrf.mxu1 }
 0x367   : > { %v1890_v7 = vadd.f32 %v3507_v47, %v1889_v20 }
 0x369   : > { %v1923_v9 = vmax.f32 %v1890_v7, 0.0 }
 0x36b   : > { %v2782_v21 = vpack.c.bf16 %v1923_v9, %v1922_v18 }
 0x36d   : > { %2798 = vst [vmem:[%s3514_s12 + $0x78] sm:$0xff] %v2782_v21  }
 0x36e   : > { %3063 = shalt.err (!%p3060_p0)
}
 0x36f   : > { %s3135_s14 = smov 64   ;;  %s3136_s4 = smov 4  }
 0x370   : > { %2829 = dma.vmem_to_hbm [thread:$0]  (%p3267_p5), %s2002_s13, 2048, %s2004_s16, %s1989_s17, %s3135_s14, %s3135_s14, %s3136_s4  }
 0x371 PF: > { %s2018_s29 = sand.u32 1, %s3106_s21   ;;  %p2846_p3 = pnand %p2125_p11, %p3221_p6 }
 0x372   : > { %s2019_s7 = scalar_lea.sflag [#allocation5], %s2018_s29 }
 0x373   : > { %p2847_p7 = pneg %p2846_p3 }
 0x375   : > { %3101 = dma.done.wait (%p2847_p7), %s2019_s7, 2048  }
 0x376   : > { %3103 = vsyncadd (%p2847_p7), %s2019_s7, 4294965248  ;;  %s24_s26 = sadd.s32 1, %s3126_s26   ;;  %s3636_s18 = sld [smem:[#allocation16_spill]] }
 0x377   : > { %p21_p9 = scmp.ge.s32.totalorder %s24_s26, 4   ;;  %s3637_s21 = smov %s3110_s22 }
 0x378   : > { %s3638_s22 = smov %s3114_s23  ;;  %s3639_s23 = smov %s3276_s28 }
 0x379   : > { %s3640_s24 = smov %s3122_s25  ;;  %23 = sbr.rel (!%p21_p9) target bundleno = 12 (0xc), region = 114 }
 0x37c   : > { %s3641_s25 = smov %s3636_s18 }
 0x37e   :  { %2025 = vsyncpa [#allocation4], 1 }
 0x37f   :  { %2027 = vsyncpa [#allocation4 + $0x1], 1 }
 0x380   :  { %2028 = vsyncpa [#allocation7], 1 }
 0x381   :  { %2029 = vsyncpa [#allocation10], 1 }
 0x382   :  { %2030 = vsyncpa [#allocation5], 1 }
 0x383   :  { %2032 = vsyncpa [#allocation5 + $0x1], 1 }

</bundles_post_ra>
